<compile_context>
chip_gen: v5e
topology: v5e:2x2
jax: 0.10.0
libtpu: 0.0.40
codegen_flags: <defaults>
</compile_context>

<pallas_src>
import jax
import jax.numpy as jnp
import numpy as np
from jax.experimental import pallas as pl
from jax.experimental.pallas import tpu as pltpu


def _round_up(x, m):
    return ((x + m - 1) // m) * m


def _pad_axis(x, axis, target):
    cur = x.shape[axis]
    if cur == target:
        return x
    pads = [(0, 0)] * x.ndim
    pads[axis] = (0, target - cur)
    return jnp.pad(x, pads)


def _pick_matmul_dtype():
    """bf16 MXU operands on bf16-native parts (v6e / v7x), f32 elsewhere (v5e...)."""
    try:
        kind = jax.devices()[0].device_kind.lower()
    except Exception:
        return jnp.float32
    if "v6" in kind or "v7" in kind:
        return jnp.bfloat16
    return jnp.float32


def _make_mlp_attention_kernel(Bb, write_weights):
    def kernel(q_ref, m_ref, bias_ref, wq_ref, bq_ref, wm_ref, v_ref, *out_refs):
        # q_ref  : (Bb, tq, Q)      m_ref : (Bb, Lm_p, M_p)   bias_ref : (Bb, 1, Lm_p) f32
        # wq_ref : (H, Q)           bq_ref: (1, H) f32
        # wm_ref : (H, M_p)         v_ref : (H, 1) f32
        # out[0] : (Bb, tq, M_p) f32        out[1] (optional): (Bb, tq, Lm_p) f32
        q = q_ref[...]
        m = m_ref[...]

        # linear_query(query): qp[b,q,h] = sum_c q[b,q,c] * wq[h,c] + bq[h]
        wq_b = jnp.broadcast_to(wq_ref[...][None, :, :], (Bb,) + wq_ref.shape)
        qp = jnp.einsum("bqc,bhc->bqh", q, wq_b,
                        preferred_element_type=jnp.float32) + bq_ref[...]

        # linear_memory(memory), produced directly with H on the sublane axis
        # and Lm on the lane axis: mpT[b,h,l] = sum_c wm[h,c] * m[b,l,c]
        wm_b = jnp.broadcast_to(wm_ref[...][None, :, :], (Bb,) + wm_ref.shape)
        mpT = jnp.einsum("bhc,blc->bhl", wm_b, m,
                         preferred_element_type=jnp.float32)

        # hidden[b,q,h,l] = tanh(qp[b,q,h] + mpT[b,h,l])  -> (Bb, tq, H, Lm_p)
        hidden = jnp.tanh(qp[:, :, :, None] + mpT[:, None, :, :])

        # attn[b,q,l] = sum_h v[h] * hidden[b,q,h,l]
        # reduction over the sublane axis (VPU adds), result lane-dense on Lm.
        vcol = v_ref[...]                                           # (H, 1) f32
        attn = jnp.sum(hidden * vcol[None, None, :, :], axis=2)     # (Bb, tq, Lm_p)

        # masked_fill + Lm padding folded into one additive bias (0 / -1e20 / -inf)
        attn = attn + bias_ref[...]

        # softmax over memory positions
        amax = jnp.max(attn, axis=-1, keepdims=True)
        e = jnp.exp(attn - amax)
        w = e / jnp.sum(e, axis=-1, keepdims=True)

        if write_weights:
            out_refs[1][...] = w

        # weighted_memory = weights @ memory
        out_refs[0][...] = jnp.einsum("bql,bld->bqd", w.astype(m.dtype), m,
                                      preferred_element_type=jnp.float32)

    return kernel


def mlp_attention(query, memory, mask, wq, bq, wm, vw, *,
                  matmul_dtype=None, return_weights=True,
                  q_block=None, batch_block=None):
    """
    query : (B, Lq, Q) f32   memory : (B, Lm, M) f32   mask : (B, Lm) bool or None
    wq : (H, Q)  bq : (H,)  wm : (H, M)  vw : (1, H)   (PyTorch nn.Linear layouts)
    Returns (weighted_memory (B, Lq, M) f32, weights (B, Lq, Lm) f32),
    or only weighted_memory if return_weights=False.
    """
    B, Lq, Q = query.shape
    _, Lm, M = memory.shape
    H = wq.shape[0]
    f32 = jnp.float32

    mm_dtype = jnp.dtype(matmul_dtype) if matmul_dtype is not None \
        else jnp.dtype(_pick_matmul_dtype())
    is_bf16 = (mm_dtype == jnp.dtype(jnp.bfloat16))

    # ---- padded sizes: lane-dense Lm / M, sublane-aligned Lq ----------------
    row_align = 16 if is_bf16 else 8
    Lm_p = _round_up(Lm, 128)
    M_p = _round_up(M, 128)

    # Lq tile: as large as possible while the f32 (Bb, tq, H, Lm_p) hidden block
    # stays a few MiB (fits v7x's smaller VMEM with double-buffering headroom).
    hidden_budget = 6 * 1024 * 1024
    if q_block is None:
        tq = min(256, _round_up(Lq, row_align))
        while tq > row_align and tq * H * Lm_p * 4 > hidden_budget:
            tq = max(row_align, _round_up(tq // 2, row_align))
    else:
        tq = _round_up(q_block, row_align)
    Lq_p = _round_up(Lq, tq)

    # Batch block: amortize per-grid-step overhead when Lq is small.
    if batch_block is None:
        per_batch_hidden = tq * H * Lm_p * 4
        Bb = max(1, min(B, 16, max(1, 256 // tq),
                        max(1, hidden_budget // per_batch_hidden)))
    else:
        Bb = max(1, min(B, batch_block))
    B_p = _round_up(B, Bb)

    # ---- operand preparation (plain XLA glue, outside the kernel) -----------
    q_p = _pad_axis(_pad_axis(query.astype(mm_dtype), 1, Lq_p), 0, B_p)        # (B_p, Lq_p, Q)
    m_p = _pad_axis(_pad_axis(_pad_axis(memory.astype(mm_dtype), 2, M_p),
                              1, Lm_p), 0, B_p)                                # (B_p, Lm_p, M_p)
    wq_c = jnp.asarray(wq, mm_dtype)                                           # (H, Q)
    wm_c = _pad_axis(jnp.asarray(wm, mm_dtype), 1, M_p)                        # (H, M_p)
    bq2 = jnp.asarray(bq, f32).reshape(1, H)                                   # (1, H)
    vcol = jnp.asarray(vw, f32).reshape(H, 1)                                  # (H, 1)

    # mask -> additive bias: 0 keep, -1e20 masked (== masked_fill semantics),
    # -inf for Lm padding (exactly excluded, even when a whole row is masked).
    if mask is not None:
        bias = jnp.where(mask, f32(-1e20), f32(0.0)).astype(f32)               # (B, Lm)
    else:
        bias = jnp.zeros((B, Lm), f32)
    if Lm_p > Lm:
        bias = jnp.concatenate(
            [bias, jnp.full((B, Lm_p - Lm), -jnp.inf, f32)], axis=1)
    if B_p > B:
        bias = jnp.concatenate(
            [bias, jnp.zeros((B_p - B, Lm_p), f32)], axis=0)
    bias = bias[:, None, :]                                                    # (B_p, 1, Lm_p)

    # ---- grid / specs -------------------------------------------------------
    grid = (B_p // Bb, Lq_p // tq)

    in_specs = [
        pl.BlockSpec((Bb, tq, Q), lambda bb, qb: (bb, qb, 0)),       # query
        pl.BlockSpec((Bb, Lm_p, M_p), lambda bb, qb: (bb, 0, 0)),    # memory (resident over qb)
        pl.BlockSpec((Bb, 1, Lm_p), lambda bb, qb: (bb, 0, 0)),      # mask/pad bias
        pl.BlockSpec((H, Q), lambda bb, qb: (0, 0)),                 # wq
        pl.BlockSpec((1, H), lambda bb, qb: (0, 0)),                 # bq
        pl.BlockSpec((H, M_p), lambda bb, qb: (0, 0)),               # wm
        pl.BlockSpec((H, 1), lambda bb, qb: (0, 0)),                 # v
    ]
    out_shapes = [jax.ShapeDtypeStruct((B_p, Lq_p, M_p), f32)]
    out_specs = [pl.BlockSpec((Bb, tq, M_p), lambda bb, qb: (bb, qb, 0))]
    if return_weights:
        out_shapes.append(jax.ShapeDtypeStruct((B_p, Lq_p, Lm_p), f32))
        out_specs.append(pl.BlockSpec((Bb, tq, Lm_p), lambda bb, qb: (bb, qb, 0)))

    grid_spec = pltpu.PrefetchScalarGridSpec(
        num_scalar_prefetch=0,
        grid=grid,
        in_specs=in_specs,
        out_specs=out_specs,
    )

    # Rough VMEM budget (double-buffered IO blocks + live f32 hidden) + headroom.
    isz = mm_dtype.itemsize
    io_bytes = (Bb * tq * Q + Bb * Lm_p * M_p) * isz + Bb * Lm_p * 4 \
        + Bb * tq * (M_p + (Lm_p if return_weights else 0)) * 4
    w_bytes = (H * Q + H * M_p) * isz + 2 * H * 4
    hid_bytes = Bb * tq * H * Lm_p * 4
    vmem_limit = int(min(max(2 * (io_bytes + hid_bytes) + w_bytes + (8 << 20),
                             32 << 20), 48 << 20))

    flops = 2 * B_p * (Lq_p * Q * H + Lm_p * M_p * H + Lq_p * Lm_p * M_p) \
        + B_p * Lq_p * Lm_p * (2 * H + 6)
    transcend = B_p * Lq_p * Lm_p * (H + 1)          # tanh + exp
    bytes_acc = (q_p.size + m_p.size + wq_c.size + wm_c.size) * isz \
        + (bias.size + bq2.size + vcol.size) * 4 \
        + sum(int(np.prod(s.shape)) * 4 for s in out_shapes)

    fn = pl.pallas_call(
        _make_mlp_attention_kernel(Bb, return_weights),
        grid_spec=grid_spec,
        out_shape=out_shapes,
        compiler_params=pltpu.CompilerParams(
            dimension_semantics=("parallel", "parallel"),
            vmem_limit_bytes=vmem_limit,
        ),
        cost_estimate=pl.CostEstimate(
            flops=int(flops),
            transcendentals=int(transcend),
            bytes_accessed=int(bytes_acc),
        ),
    )
    outs = fn(q_p, m_p, bias, wq_c, bq2, wm_c, vcol)

    wmem = outs[0][:B, :Lq, :M]
    if return_weights:
        return wmem, outs[1][:B, :Lq, :Lm]
    return wmem


def mlp_attention_ref(query, memory, mask, wq, bq, wm, vw):
    """Pure-JAX f32 reference mirroring the PyTorch forward (mode='mlp')."""
    qp = jnp.einsum("blq,hq->blh", query, wq) + bq          # (B, Lq, H)
    mp = jnp.einsum("bmk,hk->bmh", memory, wm)              # (B, Lm, H)
    hidden = jnp.tanh(qp[:, :, None, :] + mp[:, None, :, :])
    attn = jnp.einsum("bqmh,oh->bqm", hidden, vw)           # (B, Lq, Lm)
    if mask is not None:
        attn = jnp.where(mask[:, None, :], -1e20, attn)
    weights = jax.nn.softmax(attn, axis=-1)
    weighted_memory = jnp.einsum("bqm,bmd->bqd", weights, memory)
    return weighted_memory, weights


if __name__ == "__main__":
    # Small shapes consistent with the module's forward contract.
    B, Lq, Lm = 2, 8, 8
    query_size = 32
    memory_size = 32   # default: memory_size = query_size
    hidden_size = 32   # default: hidden_size = query_size

    key = jax.random.PRNGKey(0)
    k1, k2, k3, k4, k5, k6 = jax.random.split(key, 6)

    query = jax.random.normal(k1, (B, Lq, query_size), dtype=jnp.float32)
    memory = jax.random.normal(k2, (B, Lm, memory_size), dtype=jnp.float32)
    # Deterministic mask: mask out the last two memory positions of batch 1.
    mask = jnp.zeros((B, Lm), dtype=bool).at[1, Lm - 2:].set(True)

    # Deterministic parameter init (nn.Linear layouts: W is (out, in)).
    wq = 0.1 * jax.random.normal(k3, (hidden_size, query_size), dtype=jnp.float32)
    bq = 0.1 * jax.random.normal(k4, (hidden_size,), dtype=jnp.float32)
    wm = 0.1 * jax.random.normal(k5, (hidden_size, memory_size), dtype=jnp.float32)
    vw = 0.1 * jax.random.normal(k6, (1, hidden_size), dtype=jnp.float32)

    wmem, weights = mlp_attention(query, memory, mask, wq, bq, wm, vw)
    jax.block_until_ready((wmem, weights))

    wmem_ref, weights_ref = mlp_attention_ref(query, memory, mask, wq, bq, wm, vw)

    # Tolerances depend on whether the MXU path uses bf16 operands (v6e/v7x)
    # or stays fully f32 (v5e and older).
    if jnp.dtype(_pick_matmul_dtype()) == jnp.dtype(jnp.bfloat16):
        rtol, atol = 5e-2, 3e-2
    else:
        rtol, atol = 1e-5, 1e-5

    np.testing.assert_allclose(np.asarray(wmem), np.asarray(wmem_ref),
                               rtol=rtol, atol=atol)
    np.testing.assert_allclose(np.asarray(weights), np.asarray(weights_ref),
                               rtol=rtol, atol=atol)

    print("KERNEL_OK")
</pallas_src>

<mosaic_0001>
module attributes {stable_mosaic.version = 11 : i64} {
  func.func @kernel(%arg0: i32, %arg1: i32, %arg2: memref<2x8x32xf32, #tpu.memory_space<vmem>>, %arg3: memref<2x128x128xf32, #tpu.memory_space<vmem>>, %arg4: memref<2x1x128xf32, #tpu.memory_space<vmem>>, %arg5: memref<32x32xf32, #tpu.memory_space<vmem>>, %arg6: memref<1x32xf32, #tpu.memory_space<vmem>>, %arg7: memref<32x128xf32, #tpu.memory_space<vmem>>, %arg8: memref<32x1xf32, #tpu.memory_space<vmem>>, %arg9: memref<2x8x128xf32, #tpu.memory_space<vmem>>, %arg10: memref<2x8x128xf32, #tpu.memory_space<vmem>>) attributes {dimension_semantics = [#tpu.dimension_semantics<parallel>, #tpu.dimension_semantics<parallel>], iteration_bounds = array<i64: 1, 1>, scalar_prefetch = 0 : i64, scratch_operands = 0 : i64, tpu.core_type = #tpu.core_type<tc>, window_params = [{transform_indices = @transform_0, window_bounds = array<i64: 2, 8, 32>}, {transform_indices = @transform_1, window_bounds = array<i64: 2, 128, 128>}, {transform_indices = @transform_2, window_bounds = array<i64: 2, 1, 128>}, {pipeline_mode = #tpu.pipeline_mode<synchronous>, transform_indices = @transform_3, window_bounds = array<i64: 32, 32>}, {pipeline_mode = #tpu.pipeline_mode<synchronous>, transform_indices = @transform_4, window_bounds = array<i64: 1, 32>}, {pipeline_mode = #tpu.pipeline_mode<synchronous>, transform_indices = @transform_5, window_bounds = array<i64: 32, 128>}, {pipeline_mode = #tpu.pipeline_mode<synchronous>, transform_indices = @transform_6, window_bounds = array<i64: 32, 1>}, {transform_indices = @transform_7, window_bounds = array<i64: 2, 8, 128>}, {transform_indices = @transform_8, window_bounds = array<i64: 2, 8, 128>}]} {
    %c0 = arith.constant 0 : index
    %c0_0 = arith.constant 0 : index
    %c0_1 = arith.constant 0 : index
    %0 = vector.load %arg2[%c0, %c0_0, %c0_1] : memref<2x8x32xf32, #tpu.memory_space<vmem>>, vector<2x8x32xf32>
    %c0_2 = arith.constant 0 : index
    %c0_3 = arith.constant 0 : index
    %c0_4 = arith.constant 0 : index
    %1 = vector.load %arg3[%c0_2, %c0_3, %c0_4] : memref<2x128x128xf32, #tpu.memory_space<vmem>>, vector<2x128x128xf32>
    %c0_5 = arith.constant 0 : index
    %c0_6 = arith.constant 0 : index
    %2 = vector.load %arg5[%c0_5, %c0_6] : memref<32x32xf32, #tpu.memory_space<vmem>>, vector<32x32xf32>
    %3 = vector.shape_cast %2 : vector<32x32xf32> to vector<1x32x32xf32>
    %4 = vector.shape_cast %3 : vector<1x32x32xf32> to vector<1x32x32xf32>
    %5 = vector.broadcast %4 : vector<1x32x32xf32> to vector<2x32x32xf32>
    "tpu.trace_start"() <{level = 10 : i32, message = "bqc,bhc->bqh"}> : () -> ()
    %cst = arith.constant dense<0.000000e+00> : vector<2x8x32xf32>
    %6 = tpu.matmul %0, %5, %cst {dimension_numbers = #tpu.dot_dimension_numbers<[2], [2], [1], [1], [0, 0, 0, 1, 1, 1], [0], [0]>} : vector<2x8x32xf32>, vector<2x32x32xf32>, vector<2x8x32xf32> -> vector<2x8x32xf32>
    "tpu.trace_stop"() : () -> ()
    %c0_7 = arith.constant 0 : index
    %c0_8 = arith.constant 0 : index
    %7 = vector.load %arg6[%c0_7, %c0_8] : memref<1x32xf32, #tpu.memory_space<vmem>>, vector<1x32xf32>
    %8 = vector.shape_cast %7 : vector<1x32xf32> to vector<1x1x32xf32>
    %9 = vector.broadcast %8 : vector<1x1x32xf32> to vector<2x8x32xf32>
    %10 = arith.addf %6, %9 : vector<2x8x32xf32>
    %c0_9 = arith.constant 0 : index
    %c0_10 = arith.constant 0 : index
    %11 = vector.load %arg7[%c0_9, %c0_10] : memref<32x128xf32, #tpu.memory_space<vmem>>, vector<32x128xf32>
    %12 = vector.shape_cast %11 : vector<32x128xf32> to vector<1x32x128xf32>
    %13 = vector.shape_cast %12 : vector<1x32x128xf32> to vector<1x32x128xf32>
    %14 = vector.broadcast %13 : vector<1x32x128xf32> to vector<2x32x128xf32>
    "tpu.trace_start"() <{level = 10 : i32, message = "bhc,blc->bhl"}> : () -> ()
    %cst_11 = arith.constant dense<0.000000e+00> : vector<2x32x128xf32>
    %15 = tpu.matmul %14, %1, %cst_11 {dimension_numbers = #tpu.dot_dimension_numbers<[2], [2], [1], [1], [0, 0, 0, 1, 1, 1], [0], [0]>} : vector<2x32x128xf32>, vector<2x128x128xf32>, vector<2x32x128xf32> -> vector<2x32x128xf32>
    "tpu.trace_stop"() : () -> ()
    %16 = vector.shape_cast %10 : vector<2x8x32xf32> to vector<2x8x32x1xf32>
    %17 = vector.shape_cast %15 : vector<2x32x128xf32> to vector<2x1x32x128xf32>
    %18 = vector.broadcast %16 : vector<2x8x32x1xf32> to vector<2x8x32x128xf32>
    %19 = vector.broadcast %17 : vector<2x1x32x128xf32> to vector<2x8x32x128xf32>
    %20 = arith.addf %18, %19 : vector<2x8x32x128xf32>
    %21 = math.tanh %20 : vector<2x8x32x128xf32>
    %c0_12 = arith.constant 0 : index
    %c0_13 = arith.constant 0 : index
    %22 = vector.load %arg8[%c0_12, %c0_13] : memref<32x1xf32, #tpu.memory_space<vmem>>, vector<32x1xf32>
    %23 = vector.shape_cast %22 : vector<32x1xf32> to vector<1x1x32x1xf32>
    %24 = vector.broadcast %23 : vector<1x1x32x1xf32> to vector<2x8x32x128xf32>
    %25 = arith.mulf %21, %24 : vector<2x8x32x128xf32>
    %cst_14 = arith.constant dense<0.000000e+00> : vector<2x8x128xf32>
    %26 = vector.multi_reduction <add>, %25, %cst_14 [2] : vector<2x8x32x128xf32> to vector<2x8x128xf32>
    %c0_15 = arith.constant 0 : index
    %c0_16 = arith.constant 0 : index
    %c0_17 = arith.constant 0 : index
    %27 = vector.load %arg4[%c0_15, %c0_16, %c0_17] : memref<2x1x128xf32, #tpu.memory_space<vmem>>, vector<2x1x128xf32>
    %28 = vector.broadcast %27 : vector<2x1x128xf32> to vector<2x8x128xf32>
    %29 = arith.addf %26, %28 : vector<2x8x128xf32>
    %cst_18 = arith.constant dense<0xFF800000> : vector<2x8xf32>
    %30 = vector.multi_reduction <maximumf>, %29, %cst_18 [2] : vector<2x8x128xf32> to vector<2x8xf32>
    %31 = vector.shape_cast %30 : vector<2x8xf32> to vector<2x8x1xf32>
    %32 = vector.broadcast %31 : vector<2x8x1xf32> to vector<2x8x128xf32>
    %33 = arith.subf %29, %32 : vector<2x8x128xf32>
    %34 = math.exp %33 : vector<2x8x128xf32>
    %cst_19 = arith.constant dense<0.000000e+00> : vector<2x8xf32>
    %35 = vector.multi_reduction <add>, %34, %cst_19 [2] : vector<2x8x128xf32> to vector<2x8xf32>
    %36 = vector.shape_cast %35 : vector<2x8xf32> to vector<2x8x1xf32>
    %37 = vector.broadcast %36 : vector<2x8x1xf32> to vector<2x8x128xf32>
    %38 = arith.divf %34, %37 : vector<2x8x128xf32>
    %c0_20 = arith.constant 0 : index
    %c0_21 = arith.constant 0 : index
    %c0_22 = arith.constant 0 : index
    %39 = vector.load %arg10[%c0_20, %c0_21, %c0_22] : memref<2x8x128xf32, #tpu.memory_space<vmem>>, vector<2x8x128xf32>
    tpu.vector_store %arg10[%c0_20, %c0_21, %c0_22], %38 {strides = array<i32>} : memref<2x8x128xf32, #tpu.memory_space<vmem>>, vector<2x8x128xf32>,
    "tpu.trace_start"() <{level = 10 : i32, message = "bql,bld->bqd"}> : () -> ()
    %cst_23 = arith.constant dense<0.000000e+00> : vector<2x8x128xf32>
    %40 = tpu.matmul %38, %1, %cst_23 {dimension_numbers = #tpu.dot_dimension_numbers<[2], [1], [1], [2], [0, 0, 0, 1, 1, 2], [0], [0]>} : vector<2x8x128xf32>, vector<2x128x128xf32>, vector<2x8x128xf32> -> vector<2x8x128xf32>
    "tpu.trace_stop"() : () -> ()
    %c0_24 = arith.constant 0 : index
    %c0_25 = arith.constant 0 : index
    %c0_26 = arith.constant 0 : index
    %41 = vector.load %arg9[%c0_24, %c0_25, %c0_26] : memref<2x8x128xf32, #tpu.memory_space<vmem>>, vector<2x8x128xf32>
    tpu.vector_store %arg9[%c0_24, %c0_25, %c0_26], %40 {strides = array<i32>} : memref<2x8x128xf32, #tpu.memory_space<vmem>>, vector<2x8x128xf32>,
    return
  }
  func.func @transform_0(%arg0: i32, %arg1: i32) -> (i32, i32, i32) {
    %c0_i32 = arith.constant 0 : i32
    %c0_i32_0 = arith.constant 0 : i32
    return %arg0, %arg1, %c0_i32 : i32, i32, i32
  }
  func.func @transform_1(%arg0: i32, %arg1: i32) -> (i32, i32, i32) {
    %c0_i32 = arith.constant 0 : i32
    %c0_i32_0 = arith.constant 0 : i32
    %c0_i32_1 = arith.constant 0 : i32
    return %arg0, %c0_i32, %c0_i32_0 : i32, i32, i32
  }
  func.func @transform_2(%arg0: i32, %arg1: i32) -> (i32, i32, i32) {
    %c0_i32 = arith.constant 0 : i32
    %c0_i32_0 = arith.constant 0 : i32
    %c0_i32_1 = arith.constant 0 : i32
    return %arg0, %c0_i32, %c0_i32_0 : i32, i32, i32
  }
  func.func @transform_3(%arg0: i32, %arg1: i32) -> (i32, i32) {
    %c0_i32 = arith.constant 0 : i32
    %c0_i32_0 = arith.constant 0 : i32
    %c0_i32_1 = arith.constant 0 : i32
    return %c0_i32, %c0_i32_0 : i32, i32
  }
  func.func @transform_4(%arg0: i32, %arg1: i32) -> (i32, i32) {
    %c0_i32 = arith.constant 0 : i32
    %c0_i32_0 = arith.constant 0 : i32
    %c0_i32_1 = arith.constant 0 : i32
    return %c0_i32, %c0_i32_0 : i32, i32
  }
  func.func @transform_5(%arg0: i32, %arg1: i32) -> (i32, i32) {
    %c0_i32 = arith.constant 0 : i32
    %c0_i32_0 = arith.constant 0 : i32
    %c0_i32_1 = arith.constant 0 : i32
    return %c0_i32, %c0_i32_0 : i32, i32
  }
  func.func @transform_6(%arg0: i32, %arg1: i32) -> (i32, i32) {
    %c0_i32 = arith.constant 0 : i32
    %c0_i32_0 = arith.constant 0 : i32
    %c0_i32_1 = arith.constant 0 : i32
    return %c0_i32, %c0_i32_0 : i32, i32
  }
  func.func @transform_7(%arg0: i32, %arg1: i32) -> (i32, i32, i32) {
    %c0_i32 = arith.constant 0 : i32
    %c0_i32_0 = arith.constant 0 : i32
    return %arg0, %arg1, %c0_i32 : i32, i32, i32
  }
  func.func @transform_8(%arg0: i32, %arg1: i32) -> (i32, i32, i32) {
    %c0_i32 = arith.constant 0 : i32
    %c0_i32_0 = arith.constant 0 : i32
    return %arg0, %arg1, %c0_i32 : i32, i32, i32
  }
}

</mosaic_0001>

<bundles_post_ra>
// kernel: tpu_custom_call.1
= control target key start
LH: loop header
LB: loop body
LE: loop exit
PB: predicated region body
PF: predicated region fallthrough
CT: control target
= control target key end

     0   :  { %14 = vsyncpa [#allocation3], 0  ;;  %s3226_s0 = inlined_call_operand.hbm [shape: f32[2,8,32], index: 0, kind: input, shape index: {}]   ;;  %s3227_s1 = inlined_call_operand.hbm [shape: f32[2,128,128], index: 1, kind: input, shape index: {}]   ;;  %s3228_s2 = inlined_call_operand.vmem [shape: f32[2,1,128], index: 2, kind: input, shape index: {}]   ;;  %s3229_s3 = inlined_call_operand.vmem [shape: f32[32,32], index: 3, kind: input, shape index: {}]   ;;  %s3230_s4 = inlined_call_operand.vmem [shape: f32[1,32], index: 4, kind: input, shape index: {}]   ;;  %s3231_s5 = inlined_call_operand.hbm [shape: f32[32,128], index: 5, kind: input, shape index: {}]   ;;  %s3232_s6 = inlined_call_operand.vmem [shape: f32[32,1], index: 6, kind: input, shape index: {}]   ;;  %s3233_s7 = inlined_call_operand.hbm [shape: f32[2,8,128], index: 7, kind: output, shape index: {0}]   ;;  %s3234_s8 = inlined_call_operand.hbm [shape: f32[2,8,128], index: 8, kind: output, shape index: {1}]  }
   0x1   :  { %15 = vsyncpa [#allocation6], 0 }
   0x2   :  { %16 = vsyncpa [#allocation4], 0 }
   0x3   :  { %17 = vsyncpa [#allocation10], 0  ;;  %s35_s29 = sshll.u32 %s3227_s1, 4  ;;  %s2005_s30 = smov [#allocation5]   ;;  %s36_s29 = int_to_ptr.hbm [resolvable:$true] %s35_s29 }
   0x4   :  { %s37_s9 = sshll.u32 %s2005_s30, 4  ;;  %s22_s12 = sshll.u32 %s3226_s0, 4  ;;  %s38_s9 = int_to_ptr.vmem [resolvable:$true] %s37_s9  ;;  %s23_s12 = int_to_ptr.hbm [resolvable:$true] %s22_s12 }
   0x5   :  { %s2006_s13 = smov 128   ;;  %s2007_s14 = smov 8  }
   0x6   :  { %43 = dma.hbm_to_vmem [thread:$0]  %s36_s29, 4096, %s38_s9, [#allocation6], %s2006_s13, %s2006_s13, %s2007_s14  }
   0x7   :  { %s2008_s15 = smov [#allocation2]   ;;  %s54_s1 = sshll.u32 %s3231_s5, 4  ;;  %s55_s1 = int_to_ptr.hbm [resolvable:$true] %s54_s1 }
   0x8   :  { %s24_s16 = sshll.u32 %s2008_s15, 4  ;;  %s2009_s0 = smov [#allocation7]   ;;  %s25_s16 = int_to_ptr.vmem [resolvable:$true] %s24_s16 }
   0x9   :  { %30 = dma.hbm_to_vmem [thread:$0]  %s23_s12, 256, %s25_s16, [#allocation3], %s2006_s13, %s2006_s13, %s2007_s14  }
   0xa   :  { %s56_s19 = sshll.u32 %s2009_s0, 4  ;;  %s57_s19 = int_to_ptr.vmem [resolvable:$true] %s56_s19 }
   0xb   :  { %62 = dma.hbm_to_vmem [thread:$0]  %s55_s1, 512, %s57_s19, [#allocation6], %s2006_s13, %s2006_s13, %s2007_s14  }
   0xc   :  { %1997 = dma.done.wait [#allocation3], 256  }
   0xd   :  { %1998 = vsyncadd [#allocation3], 4294967040 }
   0xe   :  { %1999 = dma.done.wait [#allocation6], 4608  }
   0xf   :  { %2000 = vsyncadd [#allocation6], 4294962688  ;;  %vm119_vm0 = vcmask 261120   ;;  %v114_v0 = vld [vmem:[%s3229_s3 + $0x18] sm:$0xff]  ;;  %v94_v1 = vld [vmem:[#allocation5 + $0x78] sm:$0xff]  ;;  %v241_v24 = vlaneseq  ;;  %vm3241_vm1 = vcmask 1041409  }
  0x10   :  { %1611 = vmatpush.xpose.msk.msra.mxu0 %vm119_vm0, %v114_v0  ;;  %1616 = vmatpush.xpose.msk.msra.mxu1 %vm119_vm0, %v114_v0  ;;  %v113_v2 = vld [vmem:[%s3229_s3 + $0x10] sm:$0xff]  ;;  %v93_v3 = vld [vmem:[#allocation5 + $0x70] sm:$0xff]  ;;  %v112_v4 = vld [vmem:[%s3229_s3 + $0x8] sm:$0xff]  ;;  %vm3240_vm2 = vcmask 1042434   ;;  %vm3239_vm3 = vcmask 1043459   ;;  %vm3238_vm4 = vcmask 1044484  }
  0x11   :  { %182 = vmatpush.xpose.msra.mxu2 %v94_v1  ;;  %v92_v5 = vld [vmem:[#allocation5 + $0x68] sm:$0xff]  ;;  %v111_v6 = vld [vmem:[%s3229_s3] sm:$0xff]  ;;  %v91_v7 = vld [vmem:[#allocation5 + $0x60] sm:$0xff]  ;;  %v2098_v26 = vshrl.u32 %v241_v24, 7  ;;  %vm3237_vm5 = vcmask 1045509   ;;  %vm3236_vm6 = vcmask 1046534  }
  0x12   :  { %v77_v8 = vld [vmem:[#allocation2] sm:$0xff]  ;;  %v78_v9 = vld [vmem:[#allocation2 + $0x8] sm:$0xff]  ;;  %v88_v12 = vld [vmem:[#allocation5 + $0x48] sm:$0xff]  ;;  %vm3235_vm7 = vcmask 1047559   ;;  %s1592_s19 = sshll.u32 %s3234_s8, 4  ;;  %s2012_s20 = smov [#allocation8]   ;;  %s1593_s19 = int_to_ptr.hbm [resolvable:$true] %s1592_s19 }
  0x13   :  { %v90_v10 = vld [vmem:[#allocation5 + $0x58] sm:$0xff]  ;;  %v89_v11 = vld [vmem:[#allocation5 + $0x50] sm:$0xff]  ;;  %v87_v13 = vld [vmem:[#allocation5 + $0x40] sm:$0xff]  ;;  %1633 = vset.pattern.permute.xlu2 %v2098_v26  ;;  %1629 = vset.pattern.permute.xlu0 %v2098_v26  ;;  %v2103_v27 = vadd.s32 16, %v2098_v26  ;;  %v2126_v49 = vadd.s32 8, %v2098_v26  ;;  %v2129_v50 = vadd.s32 24, %v2098_v26 }
  0x14   :  { %1612 = vmatpush.xpose.msk.msra.mxu0 %vm119_vm0, %v113_v2  ;;  %1617 = vmatpush.xpose.msk.msra.mxu1 %vm119_vm0, %v113_v2  ;;  %v86_v14 = vld [vmem:[#allocation5 + $0x38] sm:$0xff]  ;;  %v85_v15 = vld [vmem:[#allocation5 + $0x30] sm:$0xff]  ;;  %v84_v16 = vld [vmem:[#allocation5 + $0x28] sm:$0xff]  ;;  %s1577_s5 = sshll.u32 %s2012_s20, 4  ;;  %s1579_s23 = sshll.u32 %s3233_s7, 4  ;;  %s1578_s5 = int_to_ptr.vmem [resolvable:$true] %s1577_s5  ;;  %s1580_s23 = int_to_ptr.hbm [resolvable:$true] %s1579_s23 }
  0x15   :  { %183 = vmatpush.xpose.msra.mxu2 %v93_v3  ;;  %v83_v17 = vld [vmem:[#allocation5 + $0x20] sm:$0xff]  ;;  %v82_v18 = vld [vmem:[#allocation5 + $0x18] sm:$0xff]  ;;  %v81_v19 = vld [vmem:[#allocation5 + $0x10] sm:$0xff]  ;;  %1631 = vset.pattern.permute.xlu1 %v2103_v27 }
  0x16   :  { %v80_v20 = vld [vmem:[#allocation5 + $0x8] sm:$0xff]  ;;  %v79_v21 = vld [vmem:[#allocation5] sm:$0xff]  ;;  %v110_v22 = vld [vmem:[#allocation5 + $0xf8] sm:$0xff] }
  0x17   :  { %211 = vmatpush.xpose.msra.mxu3 %v110_v22  ;;  %v109_v23 = vld [vmem:[#allocation5 + $0xf0] sm:$0xff]  ;;  %v108_v25 = vld [vmem:[#allocation5 + $0xe8] sm:$0xff]  ;;  %v2105_v28 = vld [vmem:[#allocation7] sm:$0xff] }
  0x18   :  { %1613 = vmatpush.xpose.msk.msra.mxu0 %vm119_vm0, %v112_v4  ;;  %1618 = vmatpush.xpose.msk.msra.mxu1 %vm119_vm0, %v112_v4  ;;  %v2109_v29 = vld [vmem:[#allocation7 + $0x8] sm:$0xff]  ;;  %v2112_v30 = vld [vmem:[#allocation7 + $0x10] sm:$0xff]  ;;  %v2115_v31 = vld [vmem:[#allocation7 + $0x18] sm:$0xff] }
  0x19   :  { %184 = vmatpush.xpose.msra.mxu2 %v92_v5  ;;  %v107_v32 = vld [vmem:[#allocation5 + $0xe0] sm:$0xff]  ;;  %v106_v33 = vld [vmem:[#allocation5 + $0xd8] sm:$0xff]  ;;  %v105_v34 = vld [vmem:[#allocation5 + $0xd0] sm:$0xff] }
  0x1a   :  { %v104_v35 = vld [vmem:[#allocation5 + $0xc8] sm:$0xff]  ;;  %v103_v36 = vld [vmem:[#allocation5 + $0xc0] sm:$0xff]  ;;  %v102_v37 = vld [vmem:[#allocation5 + $0xb8] sm:$0xff] }
  0x1b   :  { %212 = vmatpush.xpose.msra.mxu3 %v109_v23  ;;  %v101_v38 = vld [vmem:[#allocation5 + $0xb0] sm:$0xff]  ;;  %v100_v39 = vld [vmem:[#allocation5 + $0xa8] sm:$0xff]  ;;  %v99_v41 = vld [vmem:[#allocation5 + $0xa0] sm:$0xff] }
  0x1c   :  { %1614 = vmatpush.xpose.msk.msra.mxu0 %vm119_vm0, %v111_v6  ;;  %1619 = vmatpush.xpose.msk.msra.mxu1 %vm119_vm0, %v111_v6  ;;  %v1682_v40 = vld [vmem:[%s3230_s4] ss:$0 sm:$0xff]  ;;  %v98_v43 = vld [vmem:[#allocation5 + $0x98] sm:$0xff]  ;;  %v96_v48 = vld [vmem:[#allocation5 + $0x88] sm:$0xff] }
  0x1d   :  { %185 = vmatpush.xpose.msra.mxu2 %v91_v7  ;;  %v97_v47 = vld [vmem:[#allocation5 + $0x90] sm:$0xff]  ;;  %v95_v51 = vld [vmem:[#allocation5 + $0x80] sm:$0xff]  ;;  %v771_v4 = vld [vmem:[%s3232_s6 + $0x18] sm:$0xff] }
  0x1e   :  { %v768_v2 = vld [vmem:[%s3232_s6] sm:$0xff] }
  0x1f   :  { %1615 = vmatmul.msk.f32.vlgmr.msra.gmra.mxu0 %vm119_vm0, %v77_v8  ;;  %1620 = vmatmul.msk.f32.vlgmr.msra.gmra.mxu1 %vm119_vm0, %v78_v9 }
  0x20   :  { %1531 = vmatpush.msrb.mxu0 %v94_v1  ;;  %1551 = vmatpush.msrb.mxu1 %v110_v22 }
  0x21   :  { %186 = vmatpush.xpose.msra.mxu2 %v90_v10  ;;  %213 = vmatpush.xpose.msra.mxu3 %v108_v25 }
  0x22   :  { %1532 = vmatpush.msrb.mxu0 %v93_v3  ;;  %1552 = vmatpush.msrb.mxu1 %v109_v23  ;;  %v2010_v3 = vmov 0  }
  0x24   :  { %1533 = vmatpush.msrb.mxu0 %v92_v5  ;;  %1553 = vmatpush.msrb.mxu1 %v108_v25 }
  0x25   :  { %187 = vmatpush.xpose.msra.mxu2 %v89_v11  ;;  %214 = vmatpush.xpose.msra.mxu3 %v107_v32 }
  0x26   :  { %1534 = vmatpush.msrb.mxu0 %v91_v7  ;;  %1554 = vmatpush.msrb.mxu1 %v107_v32 }
  0x28   :  { %1535 = vmatpush.msrb.mxu0 %v90_v10  ;;  %1555 = vmatpush.msrb.mxu1 %v106_v33 }
  0x29   :  { %188 = vmatpush.xpose.msra.mxu2 %v88_v12  ;;  %215 = vmatpush.xpose.msra.mxu3 %v106_v33 }
  0x2a   :  { %1536 = vmatpush.msrb.mxu0 %v89_v11  ;;  %1556 = vmatpush.msrb.mxu1 %v105_v34 }
  0x2c   :  { %1537 = vmatpush.msrb.mxu0 %v88_v12  ;;  %1557 = vmatpush.msrb.mxu1 %v104_v35 }
  0x2d   :  { %189 = vmatpush.xpose.msra.mxu2 %v87_v13  ;;  %216 = vmatpush.xpose.msra.mxu3 %v105_v34 }
  0x2e   :  { %1538 = vmatpush.msrb.mxu0 %v87_v13  ;;  %1558 = vmatpush.msrb.mxu1 %v103_v36 }
  0x30   :  { %1539 = vmatpush.msrb.mxu0 %v86_v14  ;;  %1559 = vmatpush.msrb.mxu1 %v102_v37 }
  0x31   :  { %190 = vmatpush.xpose.msra.mxu2 %v86_v14  ;;  %217 = vmatpush.xpose.msra.mxu3 %v104_v35 }
  0x32   :  { %1540 = vmatpush.msrb.mxu0 %v85_v15  ;;  %1560 = vmatpush.msrb.mxu1 %v101_v38 }
  0x34   :  { %1541 = vmatpush.msrb.mxu0 %v84_v16  ;;  %1561 = vmatpush.msrb.mxu1 %v100_v39 }
  0x35   :  { %191 = vmatpush.xpose.msra.mxu2 %v85_v15  ;;  %218 = vmatpush.xpose.msra.mxu3 %v103_v36  ;;  %v769_v36 = vld [vmem:[%s3232_s6 + $0x8] sm:$0xff] }
  0x36   :  { %1542 = vmatpush.msrb.mxu0 %v83_v17  ;;  %1562 = vmatpush.msrb.mxu1 %v99_v41 }
  0x38   :  { %1543 = vmatpush.msrb.mxu0 %v82_v18  ;;  %1563 = vmatpush.msrb.mxu1 %v98_v43 }
  0x39   :  { %192 = vmatpush.xpose.msra.mxu2 %v84_v16  ;;  %219 = vmatpush.xpose.msra.mxu3 %v102_v37 }
  0x3a   :  { %1544 = vmatpush.msrb.mxu0 %v81_v19  ;;  %1564 = vmatpush.msrb.mxu1 %v97_v47 }
  0x3c   :  { %1545 = vmatpush.msrb.mxu0 %v80_v20  ;;  %1565 = vmatpush.msrb.mxu1 %v96_v48 }
  0x3d   :  { %193 = vmatpush.xpose.msra.mxu2 %v83_v17  ;;  %220 = vmatpush.xpose.msra.mxu3 %v101_v38 }
  0x3e   :  { %1546 = vmatpush.msrb.mxu0 %v79_v21  ;;  %1566 = vmatpush.msrb.mxu1 %v95_v51 }
  0x41   :  { %194 = vmatpush.xpose.msra.mxu2 %v82_v18  ;;  %221 = vmatpush.xpose.msra.mxu3 %v100_v39 }
  0x45   :  { %195 = vmatpush.xpose.msra.mxu2 %v81_v19  ;;  %222 = vmatpush.xpose.msra.mxu3 %v99_v41 }
  0x49   :  { %196 = vmatpush.xpose.msra.mxu2 %v80_v20  ;;  %223 = vmatpush.xpose.msra.mxu3 %v98_v43 }
  0x4d   :  { %197 = vmatpush.xpose.msra.mxu2 %v79_v21  ;;  %224 = vmatpush.xpose.msra.mxu3 %v97_v47 }
  0x50   :  { %198 = vmatmul.f32.vlgmr.msra.gmra.mxu2 %v2105_v28 }
  0x51   :  { %225 = vmatpush.xpose.msra.mxu3 %v96_v48 }
  0x55   :  { %226 = vmatpush.xpose.msra.mxu3 %v95_v51 }
  0x58   :  { %201 = vmatmul.f32.gmra.mxu2 %v2109_v29  ;;  %227 = vmatmul.f32.vlgmr.msra.gmra.mxu3 %v2105_v28 }
  0x60   :  { %204 = vmatmul.f32.gmra.mxu2 %v2112_v30  ;;  %230 = vmatmul.f32.gmra.mxu3 %v2109_v29 }
  0x68   :  { %207 = vmatmul.f32.gmra.mxu2 %v2115_v31  ;;  %233 = vmatmul.f32.gmra.mxu3 %v2112_v30 }
  0x70   :  { %236 = vmatmul.f32.gmra.mxu3 %v2115_v31 }
  0x9c   :  { %v152_v42 = vpop.f32.mrf.mxu0  ;;  %v175_v54 = vpop.f32.mrf.mxu1 }
  0x9d   :  { %v2121_v44 = vadd.f32 %v1682_v40, %v152_v42  ;;  %v2149_v55 = vadd.f32 %v1682_v40, %v175_v54  ;;  %v770_v42 = vld [vmem:[%s3232_s6 + $0x10] sm:$0xff] }
  0x9f   :  { %v265_v45 = vperm.slane %v2121_v44, 1  ;;  %v240_v46 = vperm.slane %v2121_v44, 0  ;;  %v290_v52 = vperm.slane %v2121_v44, 2  ;;  %v315_v53 = vperm.slane %v2121_v44, 3 }
  0xa0   :  { %v2152_v56 = vperm.slane %v2149_v55, 2  ;;  %v2156_v57 = vperm.slane %v2149_v55, 3  ;;  %v340_v58 = vperm.slane %v2121_v44, 4  ;;  %v465_v59 = vperm.slane %v2149_v55, 1 }
  0xa1   :  { %270 = vperm.xlu2 %1633, %v265_v45   ;;  %257 = vperm.xlu1 %1631, %v240_v46   ;;  %v2167_v60 = vperm.slane %v2121_v44, 5  ;;  %v2174_v61 = vperm.slane %v2149_v55, 0  ;;  %v2183_v62 = vperm.slane %v2121_v44, 6  ;;  %v2192_v63 = vperm.slane %v2149_v55, 4 }
  0xa2   :  { %245 = vperm.xlu0 %1629, %v240_v46   ;;  %v2201_v0 = vperm.slane %v2149_v55, 5  ;;  %v2207_v1 = vperm.slane %v2121_v44, 7  ;;  %v590_v6 = vperm.slane %v2149_v55, 6  ;;  %v615_v16 = vperm.slane %v2149_v55, 7 }
  0xa9   :  { %1634 = vset.pattern.permute.xlu2 %v2126_v49  ;;  %1632 = vset.pattern.permute.xlu1 %v2129_v50 }
  0xaa   :  { %1630 = vset.pattern.permute.xlu0 %v2126_v49 }
  0xb1   :  { %276 = vperm.xlu2 %1634, %v265_v45   ;;  %263 = vperm.xlu1 %1632, %v240_v46  }
  0xb2   :  { %251 = vperm.xlu0 %1630, %v240_v46  }
  0xb9   :  { %1636 = vset.pattern.permute.xlu2 %v2129_v50  ;;  %1635 = vset.pattern.permute.xlu1 %v2103_v27 }
  0xba   :  { %1637 = vset.pattern.permute.xlu0 %v2098_v26 }
  0xc1   :  { %288 = vperm.xlu2 %1636, %v265_v45   ;;  %282 = vperm.xlu1 %1635, %v265_v45  }
  0xc2   :  { %295 = vperm.xlu0 %1637, %v290_v52  }
  0xc9   :  { %1639 = vset.pattern.permute.xlu2 %v2103_v27  ;;  %1638 = vset.pattern.permute.xlu1 %v2126_v49 }
  0xca   :  { %1642 = vset.pattern.permute.xlu0 %v2126_v49 }
  0xd1   :  { %307 = vperm.xlu2 %1639, %v290_v52   ;;  %301 = vperm.xlu1 %1638, %v290_v52  }
  0xd2   :  { %326 = vperm.xlu0 %1642, %v315_v53  }
  0xd3   :  { %v2322_v43 = vpop.f32.mrf.mxu2 }
  0xd9   :  { %1641 = vset.pattern.permute.xlu2 %v2098_v26  ;;  %1640 = vset.pattern.permute.xlu1 %v2129_v50 }
  0xda   :  { %1647 = vset.pattern.permute.xlu0 %v2098_v26 }
  0xdb   :  { %v2331_v47 = vpop.f32.mrf.mxu2 }
  0xe1   :  { %320 = vperm.xlu2 %1641, %v315_v53   ;;  %313 = vperm.xlu1 %1640, %v290_v52  }
  0xe2   :  { %495 = vperm.xlu0 %1647, %v2152_v56  }
  0xe3   :  { %v2339_v51 = vpop.f32.mrf.mxu2 }
  0xe9   :  { %1644 = vset.pattern.permute.xlu2 %v2129_v50  ;;  %1643 = vset.pattern.permute.xlu1 %v2103_v27 }
  0xea   :  { %520 = vperm.xlu0 %1647, %v2156_v57  }
  0xf1   :  { %338 = vperm.xlu2 %1644, %v315_v53   ;;  %332 = vperm.xlu1 %1643, %v315_v53  }
  0xf2   :  { %1652 = vset.pattern.permute.xlu0 %v2126_v49 }
  0xf9   :  { %1646 = vset.pattern.permute.xlu2 %v2126_v49  ;;  %1645 = vset.pattern.permute.xlu1 %v2098_v26 }
  0xfa   :  { %351 = vperm.xlu0 %1652, %v340_v58  }
  0xfb   :  { %v2231_v5 = vpop.permute.xlu2 %270 }
  0xfc   :  { %v644_v55 = vadd.f32 %v2231_v5, %v2322_v43 }
  0xfe   :  { %1685 = vtanh.f32 %v644_v55 }
 0x101   :  { %476 = vperm.xlu2 %1646, %v465_v59   ;;  %470 = vperm.xlu1 %1645, %v465_v59  }
 0x102   :  { %376 = vperm.xlu0 %1652, %v2167_v60  }
 0x109   :  { %1649 = vset.pattern.permute.xlu2 %v2098_v26  ;;  %1648 = vset.pattern.permute.xlu1 %v2126_v49 }
 0x10a   :  { %1657 = vset.pattern.permute.xlu0 %v2103_v27 }
 0x10b   :  { %v2234_v7 = vpop.permute.xlu2 %276 }
 0x111   :  { %445 = vperm.xlu2 %1649, %v2174_v61   ;;  %501 = vperm.xlu1 %1648, %v2152_v56  }
 0x112   :  { %532 = vperm.xlu0 %1657, %v2156_v57  }
 0x113   :  { %v2238_v8 = vpop.permute.xlu1 %257 }
 0x114   :  { %v246_v23 = vpop.permute.xlu0 %245 }
 0x119   :  { %1650 = vset.pattern.permute.xlu2 %v2103_v27  ;;  %451 = vperm.xlu1 %1648, %v2174_v61  }
 0x11a   :  { %1662 = vset.pattern.permute.xlu0 %v2126_v49 }
 0x11b   :  { %v2240_v9 = vpop.permute.xlu2 %288 }
 0x121   :  { %482 = vperm.xlu2 %1650, %v465_v59   ;;  %526 = vperm.xlu1 %1648, %v2156_v57  }
 0x122   :  { %401 = vperm.xlu0 %1662, %v2183_v62  }
 0x123   :  { %v2244_v10 = vpop.permute.xlu1 %263 }
 0x129   :  { %1651 = vset.pattern.permute.xlu2 %v2098_v26  ;;  %1653 = vset.pattern.permute.xlu1 %v2103_v27 }
 0x12a   :  { %1671 = vset.pattern.permute.xlu0 %v2129_v50 }
 0x12b   :  { %v2246_v11 = vpop.permute.xlu2 %307 }
 0x131   :  { %345 = vperm.xlu2 %1651, %v340_v58   ;;  %507 = vperm.xlu1 %1653, %v2152_v56  }
 0x132   :  { %363 = vperm.xlu0 %1671, %v340_v58  }
 0x133   :  { %v2250_v12 = vpop.permute.xlu1 %282 }
 0x139   :  { %545 = vperm.xlu2 %1651, %v2192_v63   ;;  %1654 = vset.pattern.permute.xlu1 %v2126_v49 }
 0x13a   :  { %1672 = vset.pattern.permute.xlu0 %v2103_v27 }
 0x13b   :  { %v2252_v13 = vpop.permute.xlu2 %320 }
 0x141   :  { %370 = vperm.xlu2 %1651, %v2167_v60   ;;  %551 = vperm.xlu1 %1654, %v2192_v63  }
 0x142   :  { %382 = vperm.xlu0 %1672, %v2167_v60  }
 0x143   :  { %v2256_v14 = vpop.permute.xlu1 %301 }
 0x149   :  { %1656 = vset.pattern.permute.xlu2 %v2129_v50  ;;  %1655 = vset.pattern.permute.xlu1 %v2103_v27 }
 0x14a   :  { %582 = vperm.xlu0 %1672, %v2201_v0  }
 0x14b   :  { %v2258_v15 = vpop.permute.xlu2 %338 }
 0x151   :  { %488 = vperm.xlu2 %1656, %v465_v59   ;;  %457 = vperm.xlu1 %1655, %v2174_v61   ;;  %v642_v59 = vadd.f32 %v2238_v8, %v2339_v51  ;;  %v652_v8 = vadd.f32 %v2252_v13, %v2322_v43 }
 0x152   :  { %432 = vperm.xlu0 %1672, %v2207_v1  }
 0x153   :  { %v2261_v17 = vpop.permute.xlu1 %313 }
 0x159   :  { %1659 = vset.pattern.permute.xlu2 %v2126_v49  ;;  %1658 = vset.pattern.permute.xlu1 %v2098_v26 }
 0x15a   :  { %1678 = vset.pattern.permute.xlu0 %v2010_v3 }
 0x15b   :  { %774 = vperm.xlu0 %1678, %v768_v2   ;;  %v2263_v18 = vpop.permute.xlu2 %476 }
 0x161   :  { %576 = vperm.xlu2 %1659, %v2201_v0   ;;  %570 = vperm.xlu1 %1658, %v2201_v0  }
 0x163   :  { %789 = vperm.xlu0 %1678, %v771_v4   ;;  %v2267_v19 = vpop.permute.xlu1 %332  ;;  %v646_v4 = vadd.f32 %v2250_v12, %v2339_v51 }
 0x169   :  { %1661 = vset.pattern.permute.xlu2 %v2098_v26  ;;  %1660 = vset.pattern.permute.xlu1 %v2103_v27 }
 0x16b   :  { %v2269_v20 = vpop.permute.xlu2 %445 }
 0x171   :  { %395 = vperm.xlu2 %1661, %v2183_v62   ;;  %357 = vperm.xlu1 %1660, %v340_v58  }
 0x173   :  { %v2273_v21 = vpop.permute.xlu1 %470 }
 0x179   :  { %1664 = vset.pattern.permute.xlu2 %v2103_v27  ;;  %1663 = vset.pattern.permute.xlu1 %v2129_v50 }
 0x17b   :  { %v2275_v22 = vpop.permute.xlu2 %482 }
 0x181   :  { %557 = vperm.xlu2 %1664, %v2192_v63   ;;  %513 = vperm.xlu1 %1663, %v2152_v56   ;;  %v645_v56 = vadd.f32 %v2234_v7, %v2331_v47  ;;  %v2376_v7 = vpop.eup %1685 }
 0x183   :  { %v2278_v24 = vpop.permute.xlu1 %501  ;;  %1687 = vtanh.f32 %v645_v56 }
 0x184   :  { %1689 = vtanh.f32 %v642_v59 }
 0x189   :  { %1666 = vset.pattern.permute.xlu2 %v2126_v49  ;;  %1665 = vset.pattern.permute.xlu1 %v2098_v26 }
 0x18b   :  { %v2280_v25 = vpop.permute.xlu2 %345  ;;  %v2284_v28 = vpop.permute.xlu1 %451 }
 0x191   :  { %601 = vperm.xlu2 %1666, %v590_v6   ;;  %595 = vperm.xlu1 %1665, %v590_v6  }
 0x193   :  { %v2286_v29 = vpop.permute.xlu2 %545  ;;  %v2291_v32 = vpop.permute.xlu1 %526 }
 0x199   :  { %426 = vperm.xlu2 %1666, %v2207_v1   ;;  %420 = vperm.xlu1 %1665, %v2207_v1  }
 0x19b   :  { %v2293_v33 = vpop.permute.xlu2 %370 }
 0x1a1   :  { %1668 = vset.pattern.permute.xlu2 %v2129_v50  ;;  %1667 = vset.pattern.permute.xlu1 %v2129_v50 }
 0x1a3   :  { %v2299_v34 = vpop.permute.xlu1 %507 }
 0x1a9   :  { %538 = vperm.xlu2 %1668, %v2156_v57   ;;  %463 = vperm.xlu1 %1667, %v2174_v61   ;;  %v2351_v57 = vpop.f32.mrf.mxu2  ;;  %v640_v61 = vadd.f32 %v246_v23, %v2322_v43 }
 0x1aa   :  { %v655_v13 = vadd.f32 %v2258_v15, %v2351_v57 }
 0x1ab   :  { %v2301_v35 = vpop.permute.xlu2 %488  ;;  %1691 = vtanh.f32 %v640_v61 }
 0x1b1   :  { %1670 = vset.pattern.permute.xlu2 %v2126_v49  ;;  %1669 = vset.pattern.permute.xlu1 %v2098_v26  ;;  %v252_v26 = vpop.permute.xlu0 %251 }
 0x1b2   :  { %v641_v2 = vadd.f32 %v252_v26, %v2331_v47 }
 0x1b3   :  { %v2307_v37 = vpop.permute.xlu1 %551 }
 0x1b9   :  { %626 = vperm.xlu2 %1670, %v615_v16   ;;  %620 = vperm.xlu1 %1669, %v615_v16   ;;  %v296_v30 = vpop.permute.xlu0 %295 }
 0x1ba   :  { %v648_v5 = vadd.f32 %v296_v30, %v2322_v43 }
 0x1bb   :  { %v2309_v38 = vpop.permute.xlu2 %576 }
 0x1c1   :  { %1674 = vset.pattern.permute.xlu2 %v2129_v50  ;;  %1673 = vset.pattern.permute.xlu1 %v2103_v27  ;;  %v2289_v31 = vpop.permute.xlu0 %326 }
 0x1c2   :  { %v653_v12 = vadd.f32 %v2289_v31, %v2331_v47 }
 0x1c3   :  { %v2315_v40 = vpop.permute.xlu1 %457 }
 0x1c9   :  { %563 = vperm.xlu2 %1674, %v2192_v63   ;;  %407 = vperm.xlu1 %1673, %v2183_v62   ;;  %v647_v63 = vadd.f32 %v2240_v9, %v2351_v57  ;;  %v2380_v9 = vpop.eup %1687 }
 0x1cb   :  { %v2317_v41 = vpop.permute.xlu2 %395  ;;  %1693 = vtanh.f32 %v647_v63 }
 0x1d1   :  { %388 = vperm.xlu2 %1674, %v2167_v60   ;;  %607 = vperm.xlu1 %1673, %v590_v6   ;;  %v2357_v60 = vpop.f32.mrf.mxu3 }
 0x1d3   :  { %v2327_v45 = vpop.permute.xlu1 %570 }
 0x1d9   :  { %1676 = vset.pattern.permute.xlu2 %v2103_v27  ;;  %1675 = vset.pattern.permute.xlu1 %v2129_v50  ;;  %v2297_v27 = vpop.permute.xlu0 %495 }
 0x1da   :  { %v680_v31 = vadd.f32 %v2297_v27, %v2357_v60  ;;  %v654_v27 = vadd.f32 %v2267_v19, %v2339_v51  ;;  %v676_v19 = vadd.f32 %v2273_v21, %v2357_v60 }
 0x1db   :  { %v2329_v46 = vpop.permute.xlu2 %557 }
 0x1e1   :  { %632 = vperm.xlu2 %1676, %v615_v16   ;;  %588 = vperm.xlu1 %1675, %v2201_v0   ;;  %v2311_v39 = vpop.permute.xlu0 %520  ;;  %v643_v0 = vadd.f32 %v2244_v10, %v2351_v57  ;;  %v649_v10 = vadd.f32 %v2256_v14, %v2331_v47  ;;  %v651_v14 = vadd.f32 %v2261_v17, %v2351_v57 }
 0x1e2   :  { %v684_v59 = vadd.f32 %v2311_v39, %v2357_v60 }
 0x1e3   :  { %v2335_v49 = vpop.permute.xlu1 %357  ;;  %1695 = vtanh.f32 %v643_v0 }
 0x1e4   :  { %1697 = vtanh.f32 %v641_v2 }
 0x1e9   :  { %1677 = vset.pattern.permute.xlu2 %v2129_v50  ;;  %413 = vperm.xlu1 %1675, %v2183_v62   ;;  %v2325_v44 = vpop.permute.xlu0 %351 }
 0x1ea   :  { %v657_v39 = vadd.f32 %v2325_v44, %v2331_v47 }
 0x1f1   :  { %613 = vperm.xlu2 %1677, %v590_v6   ;;  %1679 = vset.pattern.permute.xlu1 %v2010_v3  ;;  %v2333_v48 = vpop.permute.xlu0 %376 }
 0x1f2   :  { %779 = vperm.xlu1 %1679, %v769_v36  }
 0x1f3   :  { %v2343_v53 = vpop.permute.xlu1 %513 }
 0x1f9   :  { %438 = vperm.xlu2 %1677, %v2207_v1   ;;  %v2341_v52 = vpop.permute.xlu0 %532 }
 0x1fa   :  { %1680 = vset.pattern.permute.xlu1 %v2129_v50  ;;  %v2337_v50 = vpop.permute.xlu2 %601 }
 0x201   :  { %1681 = vset.pattern.permute.xlu2 %v2010_v3  ;;  %v2353_v58 = vpop.permute.xlu0 %401  ;;  %v650_v3 = vadd.f32 %v2246_v11, %v2339_v51  ;;  %v2384_v11 = vpop.eup %1689 }
 0x202   :  { %784 = vperm.xlu2 %1681, %v770_v42   ;;  %638 = vperm.xlu1 %1680, %v615_v16   ;;  %v2345_v54 = vpop.permute.xlu2 %426  ;;  %v2388_v16 = vpop.f32.mrf.mxu3 }
 0x203   :  { %v2360_v62 = vpop.permute.xlu1 %595  ;;  %1699 = vtanh.f32 %v650_v3  ;;  %v2390_v23 = vpop.eup %1691  ;;  %v677_v15 = vadd.f32 %v2263_v18, %v2388_v16  ;;  %v672_v18 = vadd.f32 %v2269_v20, %v2357_v60  ;;  %v661_v20 = vadd.f32 %v2333_v48, %v2331_v47 }
 0x204   :  { %1701 = vtanh.f32 %v646_v4  ;;  %v2398_v36 = vpop.eup %1693  ;;  %v681_v21 = vadd.f32 %v2278_v24, %v2388_v16  ;;  %v656_v48 = vadd.f32 %v2280_v25, %v2322_v43 }
 0x205   :  { %1703 = vtanh.f32 %v648_v5  ;;  %v2402_v42 = vpop.eup %1695 }
 0x206   :  { %1705 = vtanh.f32 %v652_v8  ;;  %v2406_v55 = vpop.eup %1697 }
 0x207   :  { %1707 = vtanh.f32 %v649_v10 }
 0x208   :  { %1709 = vtanh.f32 %v653_v12 }
 0x209   :  { %v2374_v6 = vpop.permute.xlu0 %363  ;;  %v2410_v56 = vpop.eup %1699  ;;  %1711 = vtanh.f32 %v655_v13 }
 0x20a   :  { %v2366_v1 = vpop.permute.xlu2 %538  ;;  %v2416_v17 = vpop.eup %1701  ;;  %1713 = vtanh.f32 %v651_v14 }
 0x20b   :  { %v2394_v26 = vpop.permute.xlu1 %420  ;;  %v2420_v63 = vpop.eup %1703  ;;  %1715 = vtanh.f32 %v680_v31 }
 0x20c   :  { %v2424_v0 = vpop.eup %1705  ;;  %1717 = vtanh.f32 %v677_v15  ;;  %v2428_v2 = vpop.f32.mrf.mxu3 }
 0x20d   :  { %v2430_v3 = vpop.eup %1707  ;;  %1719 = vtanh.f32 %v684_v59  ;;  %v678_v44 = vadd.f32 %v2275_v22, %v2428_v2  ;;  %v686_v14 = vadd.f32 %v2341_v52, %v2428_v2  ;;  %v673_v22 = vadd.f32 %v2284_v28, %v2388_v16 }
 0x20e   :  { %v2438_v8 = vpop.eup %1709  ;;  %1721 = vtanh.f32 %v654_v27  ;;  %v688_v27 = vadd.f32 %v2286_v29, %v2357_v60  ;;  %v665_v28 = vadd.f32 %v2353_v58, %v2331_v47  ;;  %v660_v29 = vadd.f32 %v2293_v33, %v2322_v43 }
 0x20f   :  { %v2442_v10 = vpop.eup %1711  ;;  %1723 = vtanh.f32 %v672_v18  ;;  %v685_v18 = vadd.f32 %v2291_v32, %v2388_v16  ;;  %v682_v32 = vadd.f32 %v2299_v34, %v2428_v2  ;;  %v659_v58 = vadd.f32 %v2374_v6, %v2351_v57 }
 0x210   :  { %v2446_v12 = vpop.eup %1713  ;;  %1725 = vtanh.f32 %v657_v39  ;;  %v693_v6 = vadd.f32 %v2309_v38, %v2388_v16 }
 0x211   :  { %v2414_v61 = vpop.permute.xlu0 %382  ;;  %v2450_v13 = vpop.eup %1715  ;;  %1727 = vtanh.f32 %v676_v19 }
 0x212   :  { %v2454_v31 = vpop.eup %1717  ;;  %1729 = vtanh.f32 %v661_v20  ;;  %v662_v34 = vadd.f32 %v2414_v61, %v2339_v51  ;;  %v674_v61 = vadd.f32 %v2315_v40, %v2428_v2  ;;  %v690_v40 = vadd.f32 %v2329_v46, %v2428_v2 }
 0x213   :  { %v2396_v30 = vpop.permute.xlu2 %626  ;;  %3242 = vst [vmem:[#allocation15_spill] sm:$0xff] %v2454_v31  ;;  %v2458_v15 = vpop.eup %1719  ;;  %1731 = vtanh.f32 %v678_v44 }
 0x214   :  { %v2462_v24 = vpop.eup %1721  ;;  %1733 = vtanh.f32 %v681_v21  ;;  %v2480_v20 = vpop.f32.mrf.mxu3 }
 0x215   :  { %v2466_v52 = vpop.eup %1723  ;;  %1735 = vtanh.f32 %v686_v14  ;;  %v679_v33 = vadd.f32 %v2301_v35, %v2480_v20  ;;  %v687_v46 = vadd.f32 %v2366_v1, %v2480_v20 }
 0x216   :  { %v2472_v39 = vpop.eup %1725  ;;  %1737 = vtanh.f32 %v656_v48 }
 0x217   :  { %v2476_v19 = vpop.eup %1727  ;;  %1739 = vtanh.f32 %v673_v22 }
 0x218   :  { %v2484_v21 = vpop.eup %1729  ;;  %1741 = vtanh.f32 %v688_v27  ;;  %v689_v27 = vadd.f32 %v2307_v37, %v2388_v16 }
 0x219   :  { %v583_v59 = vpop.permute.xlu0 %582  ;;  %3243 = vst [vmem:[#allocation16_spill] sm:$0xff] %v2484_v21  ;;  %v2488_v14 = vpop.eup %1731  ;;  %1743 = vtanh.f32 %v685_v18 }
 0x21a   :  { %v2492_v48 = vpop.eup %1733  ;;  %1745 = vtanh.f32 %v665_v28  ;;  %v694_v37 = vadd.f32 %v583_v59, %v2428_v2  ;;  %v692_v59 = vadd.f32 %v2327_v45, %v2357_v60  ;;  %v683_v45 = vadd.f32 %v2343_v53, %v2480_v20 }
 0x21b   :  { %v2434_v4 = vpop.permute.xlu1 %463  ;;  %3244 = vst [vmem:[#allocation17_spill] sm:$0xff] %v2492_v48  ;;  %v2496_v22 = vpop.eup %1735  ;;  %1747 = vtanh.f32 %v660_v29  ;;  %v668_v53 = vadd.f32 %v2394_v26, %v2322_v43 }
 0x21c   :  { %v2500_v31 = vpop.eup %1737  ;;  %1749 = vtanh.f32 %v682_v32  ;;  %v675_v1 = vadd.f32 %v2434_v4, %v2480_v20 }
 0x21d   :  { %v2504_v18 = vpop.eup %1739  ;;  %1751 = vtanh.f32 %v659_v58 }
 0x21e   :  { %3245 = vst [vmem:[#allocation18_spill] sm:$0xff] %v2504_v18  ;;  %v2510_v48 = vpop.eup %1741  ;;  %1753 = vtanh.f32 %v679_v33  ;;  %v664_v33 = vadd.f32 %v2317_v41, %v2322_v43  ;;  %v697_v41 = vadd.f32 %v2337_v50, %v2388_v16  ;;  %v696_v50 = vadd.f32 %v2360_v62, %v2357_v60 }
 0x21f   :  { %v2513_v29 = vpop.eup %1743  ;;  %1755 = vtanh.f32 %v689_v27 }
 0x220   :  { %3246 = vst [vmem:[#allocation19_spill] sm:$0xff] %v2513_v29  ;;  %v2517_v18 = vpop.eup %1745  ;;  %1757 = vtanh.f32 %v662_v34 }
 0x221   :  { %v433_v28 = vpop.permute.xlu0 %432  ;;  %3247 = vst [vmem:[#allocation20_spill] sm:$0xff] %v2517_v18  ;;  %v2520_v58 = vpop.eup %1747  ;;  %1759 = vtanh.f32 %v693_v6  ;;  %v658_v6 = vadd.f32 %v2335_v49, %v2339_v51 }
 0x222   :  { %v670_v38 = vadd.f32 %v433_v28, %v2339_v51  ;;  %v2524_v21 = vpop.eup %1749  ;;  %1761 = vtanh.f32 %v694_v37 }
 0x223   :  { %v2436_v5 = vpop.permute.xlu2 %563  ;;  %v2528_v27 = vpop.eup %1751  ;;  %1763 = vtanh.f32 %v674_v61 }
 0x224   :  { %v2532_v34 = vpop.eup %1753  ;;  %1765 = vtanh.f32 %v670_v38 }
 0x225   :  { %v2536_v28 = vpop.eup %1755  ;;  %1767 = vtanh.f32 %v664_v33 }
 0x226   :  { %3248 = vst [vmem:[#allocation21_spill] sm:$0xff] %v2536_v28  ;;  %v2540_v37 = vpop.eup %1757  ;;  %1769 = vtanh.f32 %v692_v59 }
 0x227   :  { %v2544_v61 = vpop.eup %1759  ;;  %1771 = vtanh.f32 %v690_v40 }
 0x228   :  { %3249 = vst [vmem:[#allocation22_spill] sm:$0xff] %v2544_v61  ;;  %v2548_v29 = vpop.eup %1761  ;;  %1773 = vtanh.f32 %v658_v6  ;;  %v691_v6 = vadd.f32 %v2436_v5, %v2480_v20 }
 0x229   :  { %v2552_v33 = vpop.eup %1763  ;;  %1775 = vtanh.f32 %v697_v41  ;;  %v2558_v40 = vpop.permute.xlu0 %774 }
 0x22a   :  { %v2556_v59 = vpop.eup %1765  ;;  %1777 = vtanh.f32 %v683_v45 }
 0x22b   :  { %v2470_v25 = vpop.permute.xlu1 %620  ;;  %v2482_v44 = vpop.permute.xlu2 %388  ;;  %1779 = vtanh.f32 %v687_v46 }
 0x22c   :  { %v1768_v61 = vpop.eup %1767  ;;  %1781 = vtanh.f32 %v696_v50  ;;  %v663_v41 = vadd.f32 %v2482_v44, %v2351_v57  ;;  %v700_v43 = vadd.f32 %v2470_v25, %v2357_v60 }
 0x22d   :  { %v1770_v62 = vpop.eup %1769  ;;  %1783 = vtanh.f32 %v668_v53 }
 0x22e   :  { %v2566_v28 = vpop.eup %1771  ;;  %1785 = vtanh.f32 %v675_v1  ;;  %v669_v1 = vadd.f32 %v2345_v54, %v2331_v47  ;;  %v2596_v47 = vmul.f32 %v2424_v0, %v2558_v40 }
 0x22f   :  { %v2570_v26 = vpop.eup %1773  ;;  %1787 = vtanh.f32 %v691_v6  ;;  %v2586_v6 = vmul.f32 %v2376_v7, %v2558_v40  ;;  %v701_v7 = vadd.f32 %v2396_v30, %v2388_v16  ;;  %v2617_v16 = vmul.f32 %v2476_v19, %v2558_v40 }
 0x230   :  { %v2573_v45 = vpop.eup %1775  ;;  %1789 = vtanh.f32 %v663_v41 }
 0x231   :  { %v1778_v50 = vpop.eup %1777  ;;  %1791 = vtanh.f32 %v700_v43  ;;  %v2604_v43 = vmul.f32 %v2500_v31, %v2558_v40  ;;  %v2621_v31 = vmul.f32 %v2450_v13, %v2558_v40  ;;  %v2640_v13 = vmul.f32 %v1768_v61, %v2558_v40 }
 0x232   :  { %v1780_v53 = vpop.eup %1779 }
 0x233   :  { %v1782_v25 = vpop.eup %1781 }
 0x234   :  { %v1784_v41 = vpop.eup %1783 }
 0x235   :  { %v1786_v54 = vpop.eup %1785 }
 0x23b   :  { %v2508_v35 = vpop.permute.xlu1 %407  ;;  %v633_v32 = vpop.permute.xlu2 %632 }
 0x23c   :  { %v702_v60 = vadd.f32 %v633_v32, %v2428_v2  ;;  %v2592_v32 = vmul.f32 %v2420_v63, %v2558_v40  ;;  %v1788_v63 = vpop.eup %1787 }
 0x23d   :  { %v1790_v30 = vpop.eup %1789 }
 0x243   :  { %v608_v38 = vpop.permute.xlu1 %607 }
 0x244   :  { %v698_v0 = vadd.f32 %v608_v38, %v2428_v2  ;;  %v2629_v2 = vmul.f32 %v2510_v48, %v2558_v40 }
 0x24b   :  { %v614_v49 = vpop.permute.xlu2 %613 }
 0x24c   :  { %v699_v4 = vadd.f32 %v614_v49, %v2480_v20  ;;  %v2582_v49 = vmul.f32 %v2390_v23, %v2558_v40  ;;  %v2598_v23 = vpop.permute.xlu0 %789 }
 0x24d   :  { %v2633_v19 = vmul.f32 %v2402_v42, %v2598_v23  ;;  %v2637_v38 = vmul.f32 %v2398_v36, %v2598_v23  ;;  %v2645_v48 = vmul.f32 %v2446_v12, %v2598_v23  ;;  %v2656_v61 = vmul.f32 %v2528_v27, %v2598_v23 }
 0x24e   :  { %1793 = vtanh.f32 %v699_v4  ;;  %v2673_v27 = vmul.f32 %v1786_v54, %v2598_v23 }
 0x253   :  { %v439_v5 = vpop.permute.xlu2 %438  ;;  %v589_v46 = vpop.permute.xlu1 %588 }
 0x254   :  { %v671_v44 = vadd.f32 %v439_v5, %v2351_v57  ;;  %v695_v18 = vadd.f32 %v589_v46, %v2480_v20  ;;  %v666_v5 = vadd.f32 %v2508_v35, %v2339_v51  ;;  %v2608_v51 = vmul.f32 %v2520_v58, %v2558_v40 }
 0x255   :  { %v2613_v35 = vmul.f32 %v2466_v52, %v2558_v40  ;;  %v1792_v52 = vpop.eup %1791  ;;  %v2649_v46 = vmul.f32 %v2442_v10, %v2598_v23  ;;  %v2666_v10 = vmul.f32 %v1780_v53, %v2598_v23 }
 0x256   :  { %1795 = vtanh.f32 %v671_v44  ;;  %v2652_v44 = vmul.f32 %v1770_v62, %v2558_v40  ;;  %v2669_v62 = vmul.f32 %v1782_v25, %v2558_v40 }
 0x257   :  { %1797 = vtanh.f32 %v695_v18  ;;  %v2625_v18 = vmul.f32 %v2458_v15, %v2558_v40  ;;  %v1794_v15 = vpop.eup %1793  ;;  %3251 = vst [vmem:[#allocation24_spill] sm:$0xff] %v2666_v10 }
 0x258   :  { %1799 = vtanh.f32 %v702_v60  ;;  %v2663_v60 = vmul.f32 %v1778_v50, %v2598_v23  ;;  %3252 = vst [vmem:[#allocation25_spill] sm:$0xff] %v2669_v62  ;;  %v2681_v53 = vmul.f32 %v1794_v15, %v2598_v23 }
 0x259   :  { %1801 = vtanh.f32 %v669_v1 }
 0x25a   :  { %1803 = vtanh.f32 %v666_v5  ;;  %3250 = vst [vmem:[#allocation23_spill] sm:$0xff] %v2663_v60  ;;  %v820_v5 = vmul.f32 %v1784_v41, %v2558_v40 }
 0x25b   :  { %v414_v58 = vpop.permute.xlu1 %413  ;;  %1805 = vtanh.f32 %v701_v7  ;;  %v815_v7 = vmul.f32 %v1790_v30, %v2598_v23  ;;  %3254 = vst [vmem:[#allocation27_spill] sm:$0xff] %v2681_v53 }
 0x25c   :  { %v667_v4 = vadd.f32 %v414_v58, %v2351_v57  ;;  %v1796_v42 = vpop.eup %1795  ;;  %1807 = vtanh.f32 %v698_v0  ;;  %v785_v36 = vpop.permute.xlu2 %784  ;;  %v2660_v57 = vmul.f32 %v2532_v34, %v2598_v23  ;;  %v2676_v34 = vmul.f32 %v1788_v63, %v2598_v23 }
 0x25d   :  { %v1798_v12 = vpop.eup %1797  ;;  %v852_v0 = vmul.f32 %v1792_v52, %v2558_v40  ;;  %v2684_v25 = vmul.f32 %v1796_v42, %v2598_v23  ;;  %v794_v54 = vmul.f32 %v2384_v11, %v785_v36  ;;  %v798_v63 = vmul.f32 %v2416_v17, %v785_v36 }
 0x25e   :  { %1809 = vtanh.f32 %v667_v4  ;;  %v1800_v1 = vpop.eup %1799  ;;  %3253 = vst [vmem:[#allocation26_spill] sm:$0xff] %v2676_v34  ;;  %v2687_v41 = vmul.f32 %v1798_v12, %v2598_v23  ;;  %v802_v30 = vmul.f32 %v2410_v56, %v785_v36  ;;  %v806_v40 = vmul.f32 %v2462_v24, %v785_v36 }
 0x25f   :  { %v1802_v50 = vpop.eup %1801  ;;  %v854_v58 = vmul.f32 %v1800_v1, %v785_v36  ;;  %v810_v52 = vmul.f32 %v2570_v26, %v785_v36  ;;  %v814_v15 = vmul.f32 %v2540_v37, %v785_v36  ;;  %v822_v1 = vmul.f32 %v2556_v59, %v785_v36 }
 0x260   :  { %v1804_v4 = vpop.eup %1803  ;;  %3255 = vst [vmem:[#allocation28_spill] sm:$0xff] %v2687_v41  ;;  %v2697_v12 = vmul.f32 %v2552_v33, %v785_v36  ;;  %v2700_v11 = vmul.f32 %v2488_v14, %v785_v36  ;;  %v2703_v17 = vmul.f32 %v2524_v21, %v785_v36  ;;  %v2708_v24 = vmul.f32 %v2496_v22, %v785_v36 }
 0x261   :  { %v1806_v34 = vpop.eup %1805  ;;  %v818_v42 = vmul.f32 %v1804_v4, %v785_v36  ;;  %v2711_v37 = vmul.f32 %v2566_v28, %v785_v36  ;;  %v2714_v59 = vmul.f32 %v2548_v29, %v785_v36 }
 0x262   :  { %v1808_v53 = vpop.eup %1807 }
 0x263   :  { %3256 = vst [vmem:[#allocation29_spill] sm:$0xff] %v2714_v59  ;;  %v2716_v33 = vmul.f32 %v1808_v53, %v785_v36  ;;  %v3258_v36 = vld [vmem:[#allocation16_spill] sm:$0xff] }
 0x264   :  { %v1810_v56 = vpop.eup %1809  ;;  %v2705_v41 = vpop.permute.xlu1 %779 }
 0x265   :  { %3257 = vst [vmem:[#allocation30_spill] sm:$0xff] %v2716_v33  ;;  %v819_v14 = vmul.f32 %v1810_v56, %v2598_v23  ;;  %v853_v26 = vmul.f32 %v1806_v34, %v2705_v41  ;;  %v793_v21 = vmul.f32 %v2406_v55, %v2705_v41  ;;  %v797_v4 = vmul.f32 %v2380_v9, %v2705_v41  ;;  %v3259_v34 = vld [vmem:[#allocation20_spill] sm:$0xff] }
 0x266   :  { %v801_v22 = vmul.f32 %v2430_v3, %v2705_v41  ;;  %v805_v28 = vmul.f32 %v2438_v8, %v2705_v41  ;;  %v809_v29 = vmul.f32 %v2472_v39, %v2705_v41  ;;  %v813_v53 = vmul.f32 %v3258_v36, %v2705_v41 }
 0x267   :  { %v991_v56 = vadd.f32 %v853_v26, %v852_v0  ;;  %v817_v33 = vmul.f32 %v3259_v34, %v2705_v41  ;;  %v821_v55 = vmul.f32 %v1802_v50, %v2705_v41  ;;  %v856_v9 = vadd.f32 %v793_v21, %v2582_v49 }
 0x268   :  { %v865_v59 = vadd.f32 %v797_v4, %v2586_v6  ;;  %v874_v3 = vadd.f32 %v801_v22, %v2592_v32  ;;  %v883_v8 = vadd.f32 %v805_v28, %v2596_v47  ;;  %v892_v10 = vadd.f32 %v809_v29, %v2604_v43 }
 0x269   :  { %v2740_v39 = vadd.f32 %v991_v56, %v854_v58  ;;  %v857_v60 = vadd.f32 %v856_v9, %v794_v54  ;;  %v901_v0 = vadd.f32 %v813_v53, %v2608_v51  ;;  %v910_v26 = vadd.f32 %v817_v33, %v2640_v13 }
 0x26a   :  { %v866_v36 = vadd.f32 %v865_v59, %v798_v63  ;;  %v875_v34 = vadd.f32 %v874_v3, %v802_v30  ;;  %v884_v50 = vadd.f32 %v883_v8, %v806_v40  ;;  %v893_v62 = vadd.f32 %v892_v10, %v810_v52 }
 0x26b   :  { %v858_v49 = vadd.f32 %v857_v60, %v2633_v19  ;;  %v902_v6 = vadd.f32 %v901_v0, %v814_v15  ;;  %v911_v21 = vadd.f32 %v910_v26, %v818_v42  ;;  %v919_v32 = vadd.f32 %v821_v55, %v820_v5 }
 0x26c   :  { %v867_v47 = vadd.f32 %v866_v36, %v2637_v38  ;;  %v876_v43 = vadd.f32 %v875_v34, %v2645_v48  ;;  %v885_v58 = vadd.f32 %v884_v50, %v2649_v46  ;;  %v894_v54 = vadd.f32 %v893_v62, %v2656_v61  ;;  %v1683_v50 = vld [vmem:[%s3228_s2] ss:$0 sm:$0xff] }
 0x26d   :  { %v859_v51 = vrot.slane %v858_v49, 4  ;;  %v903_v4 = vadd.f32 %v902_v6, %v815_v7  ;;  %v912_v13 = vadd.f32 %v911_v21, %v819_v14  ;;  %v920_v63 = vadd.f32 %v919_v32, %v822_v1 }
 0x26e   :  { %v868_v30 = vrot.slane %v867_v47, 4  ;;  %v877_v40 = vrot.slane %v876_v43, 4  ;;  %v886_v10 = vrot.slane %v885_v58, 4  ;;  %v895_v52 = vrot.slane %v894_v54, 4 }
 0x26f   :  { %v860_v19 = vadd.f32 %v859_v51, %v858_v49  ;;  %v904_v60 = vrot.slane %v903_v4, 4  ;;  %v913_v15 = vrot.slane %v912_v13, 4  ;;  %v921_v5 = vadd.f32 %v920_v63, %v2684_v25 }
 0x270   :  { %v869_v38 = vadd.f32 %v868_v30, %v867_v47  ;;  %v878_v42 = vadd.f32 %v877_v40, %v876_v43  ;;  %v887_v48 = vadd.f32 %v886_v10, %v885_v58  ;;  %v896_v59 = vadd.f32 %v895_v52, %v894_v54 }
 0x271   :  { %v861_v46 = vrot.slane %v860_v19, 2  ;;  %v905_v33 = vadd.f32 %v904_v60, %v903_v4  ;;  %v914_v61 = vadd.f32 %v913_v15, %v912_v13  ;;  %v922_v62 = vrot.slane %v921_v5, 4 }
 0x272   :  { %v870_v7 = vrot.slane %v869_v38, 2  ;;  %v879_v14 = vrot.slane %v878_v42, 2  ;;  %v888_v1 = vrot.slane %v887_v48, 2  ;;  %v897_v22 = vrot.slane %v896_v59, 2 }
 0x273   :  { %v862_v28 = vadd.f32 %v861_v46, %v860_v19  ;;  %v906_v29 = vrot.slane %v905_v33, 2  ;;  %v915_v53 = vrot.slane %v914_v61, 2  ;;  %v923_v56 = vadd.f32 %v922_v62, %v921_v5 }
 0x274   :  { %v639_v55 = vpop.permute.xlu1 %638  ;;  %v871_v9 = vadd.f32 %v870_v7, %v869_v38  ;;  %v880_v25 = vadd.f32 %v879_v14, %v878_v42  ;;  %v889_v3 = vadd.f32 %v888_v1, %v887_v48  ;;  %v898_v8 = vadd.f32 %v897_v22, %v896_v59  ;;  %v3260_v22 = vld [vmem:[#allocation18_spill] sm:$0xff] }
 0x275   :  { %v703_v0 = vadd.f32 %v639_v55, %v2480_v20  ;;  %v863_v26 = vrot.slane %v862_v28, 1  ;;  %v907_v36 = vadd.f32 %v906_v29, %v905_v33  ;;  %v916_v34 = vadd.f32 %v915_v53, %v914_v61 }
 0x276   :  { %v872_v49 = vrot.slane %v871_v9, 1  ;;  %v881_v6 = vrot.slane %v880_v25, 1  ;;  %v890_v21 = vrot.slane %v889_v3, 1  ;;  %v899_v32 = vrot.slane %v898_v8, 1 }
 0x277   :  { %1811 = vtanh.f32 %v703_v0  ;;  %v864_v47 = vadd.f32 %v863_v26, %v862_v28  ;;  %v908_v43 = vrot.slane %v907_v36, 1  ;;  %v917_v58 = vrot.slane %v916_v34, 1  ;;  %v3264_v26 = vld [vmem:[#allocation21_spill] sm:$0xff] }
 0x278   :  { %v873_v54 = vadd.f32 %v872_v49, %v871_v9  ;;  %v882_v51 = vadd.f32 %v881_v6, %v880_v25  ;;  %v891_v20 = vadd.f32 %v890_v21, %v889_v3  ;;  %v900_v4 = vadd.f32 %v899_v32, %v898_v8  ;;  %v3262_v9 = vld [vmem:[#allocation17_spill] sm:$0xff]  ;;  %v3263_v8 = vld [vmem:[#allocation19_spill] sm:$0xff]  ;;  %v3265_v6 = vld [vmem:[#allocation22_spill] sm:$0xff] }
 0x279   :  { %v909_v13 = vadd.f32 %v908_v43, %v907_v36  ;;  %v918_v63 = vadd.f32 %v917_v58, %v916_v34  ;;  %v924_v30 = vrot.slane %v923_v56, 2  ;;  %v2754_v40 = vadd.f32 %v1683_v50, %v864_v47 }
 0x27a   :  { %v2756_v10 = vadd.f32 %v1683_v50, %v873_v54  ;;  %v2758_v52 = vadd.f32 %v1683_v50, %v882_v51  ;;  %v2760_v19 = vadd.f32 %v1683_v50, %v891_v20  ;;  %v2762_v60 = vadd.f32 %v1683_v50, %v900_v4 }
 0x27b   :  { %v925_v15 = vadd.f32 %v924_v30, %v923_v56  ;;  %v2764_v5 = vadd.f32 %v1683_v50, %v909_v13  ;;  %v2766_v38 = vadd.f32 %v1683_v50, %v918_v63  ;;  %v825_v28 = vmul.f32 %v3260_v22, %v2705_v41  ;;  %v3261_v56 = vld [vmem:[#allocation15_spill] sm:$0xff] }
 0x27c   :  { %v1040_v42 = vrot.slane %v2756_v10, 7  ;;  %v1043_v48 = vrot.slane %v2758_v52, 6  ;;  %v1046_v59 = vrot.slane %v2760_v19, 5  ;;  %v1049_v46 = vrot.slane %v2762_v60, 4 }
 0x27d   :  { %v1812_v33 = vpop.eup %1811  ;;  %v926_v61 = vrot.slane %v925_v15, 1  ;;  %v1052_v62 = vrot.slane %v2764_v5, 3  ;;  %v1055_v7 = vrot.slane %v2766_v38, 2  ;;  %v829_v55 = vmul.f32 %v3261_v56, %v2705_v41  ;;  %v3273_v56 = vld [vmem:[#allocation27_spill] sm:$0xff] }
 0x27e   :  { %v855_v14 = vmul.f32 %v1812_v33, %v2598_v23  ;;  %v1042_v1 = vsel %vm3241_vm1, %v1040_v42, %v2754_v40  ;;  %v833_v25 = vmul.f32 %v3262_v9, %v2705_v41  ;;  %v837_v0 = vmul.f32 %v3263_v8, %v2705_v41 }
 0x27f   :  { %v927_v29 = vadd.f32 %v926_v61, %v925_v15  ;;  %v1045_v53 = vsel %vm3240_vm2, %v1043_v48, %v1042_v1  ;;  %v841_v36 = vmul.f32 %v3264_v26, %v2705_v41  ;;  %v845_v21 = vmul.f32 %v3265_v6, %v2705_v41 }
 0x280   :  { %v993_v3 = vadd.f32 %v2740_v39, %v855_v14  ;;  %v1048_v23 = vsel %vm3239_vm3, %v1046_v59, %v1045_v53  ;;  %v849_v32 = vmul.f32 %v2573_v45, %v2705_v41  ;;  %v928_v43 = vadd.f32 %v825_v28, %v2613_v35 }
 0x281   :  { %v2790_v34 = vadd.f32 %v1683_v50, %v927_v29  ;;  %v1051_v49 = vsel %vm3238_vm4, %v1049_v46, %v1048_v23  ;;  %v937_v58 = vadd.f32 %v829_v55, %v2617_v16  ;;  %v946_v51 = vadd.f32 %v833_v25, %v2621_v31  ;;  %v3269_v46 = vld [vmem:[#allocation29_spill] sm:$0xff] }
 0x282   :  { %v994_v47 = vrot.slane %v993_v3, 4  ;;  %v1054_v39 = vsel %vm3237_vm5, %v1052_v62, %v1051_v49  ;;  %v955_v20 = vadd.f32 %v837_v0, %v2625_v18  ;;  %v929_v13 = vadd.f32 %v928_v43, %v2697_v12  ;;  %v3266_v12 = vld [vmem:[#allocation25_spill] sm:$0xff]  ;;  %v3270_v62 = vld [vmem:[#allocation26_spill] sm:$0xff] }
 0x283   :  { %v1057_v54 = vsel %vm3236_vm6, %v1055_v7, %v1054_v39  ;;  %v1058_v50 = vrot.slane %v2790_v34, 1  ;;  %v938_v45 = vadd.f32 %v937_v58, %v2700_v11  ;;  %v964_v41 = vadd.f32 %v841_v36, %v2629_v2  ;;  %v3267_v11 = vld [vmem:[#allocation23_spill] sm:$0xff]  ;;  %v3268_v2 = vld [vmem:[#allocation24_spill] sm:$0xff]  ;;  %v3271_v7 = vld [vmem:[#allocation30_spill] sm:$0xff] }
 0x284   :  { %v995_v4 = vadd.f32 %v994_v47, %v993_v3  ;;  %v947_v35 = vadd.f32 %v946_v51, %v2703_v17  ;;  %v956_v16 = vadd.f32 %v955_v20, %v2708_v24  ;;  %v973_v30 = vadd.f32 %v845_v21, %v2652_v44 }
 0x285   :  { %v1060_v63 = vsel %vm3235_vm7, %v1058_v50, %v1057_v54  ;;  %v930_v31 = vadd.f32 %v929_v13, %v2673_v27  ;;  %v939_v18 = vadd.f32 %v938_v45, %v2660_v57  ;;  %v965_v15 = vadd.f32 %v964_v41, %v2711_v37  ;;  %v3272_v57 = vld [vmem:[#allocation28_spill] sm:$0xff]  ;;  %v1684_v45 = vld [vmem:[%s3228_s2 + $0x1] ss:$0 sm:$0xff]  ;;  %s2011_s2 = smov [#allocation9]  }
 0x286   :  { %1077 = vmax.xlane.f32.xlu1 %v1060_v63  ;;  %v982_v42 = vadd.f32 %v849_v32, %v3266_v12  ;;  %v948_v48 = vadd.f32 %v947_v35, %v3267_v11  ;;  %v957_v59 = vadd.f32 %v956_v16, %v3268_v2  ;;  %v974_v33 = vadd.f32 %v973_v30, %v3269_v46  ;;  %s1590_s18 = sshll.u32 %s2011_s2, 4  ;;  %s1591_s18 = int_to_ptr.vmem [resolvable:$true] %s1590_s18 }
 0x287   :  { %v996_v17 = vrot.slane %v995_v4, 2  ;;  %v931_v61 = vrot.slane %v930_v31, 4  ;;  %v940_v24 = vrot.slane %v939_v18, 4  ;;  %v966_v44 = vadd.f32 %v965_v15, %v3270_v62 }
 0x288   :  { %v983_v14 = vadd.f32 %v982_v42, %v3271_v7  ;;  %v949_v27 = vrot.slane %v948_v48, 4  ;;  %v958_v1 = vrot.slane %v957_v59, 4  ;;  %v975_v22 = vadd.f32 %v974_v33, %v3272_v57 }
 0x289   :  { %v997_v37 = vadd.f32 %v996_v17, %v995_v4  ;;  %v932_v28 = vadd.f32 %v931_v61, %v930_v31  ;;  %v941_v29 = vadd.f32 %v940_v24, %v939_v18  ;;  %v967_v53 = vrot.slane %v966_v44, 4 }
 0x28a   :  { %v984_v55 = vadd.f32 %v983_v14, %v3273_v56  ;;  %v950_v9 = vadd.f32 %v949_v27, %v948_v48  ;;  %v959_v25 = vadd.f32 %v958_v1, %v957_v59  ;;  %v976_v3 = vrot.slane %v975_v22, 4 }
 0x28b   :  { %v933_v23 = vrot.slane %v932_v28, 2  ;;  %v942_v8 = vrot.slane %v941_v29, 2  ;;  %v968_v0 = vadd.f32 %v967_v53, %v966_v44  ;;  %v998_v21 = vrot.slane %v997_v37, 1 }
 0x28c   :  { %v985_v26 = vrot.slane %v984_v55, 4  ;;  %v951_v36 = vrot.slane %v950_v9, 2  ;;  %v960_v49 = vrot.slane %v959_v25, 2  ;;  %v977_v6 = vadd.f32 %v976_v3, %v975_v22 }
 0x28d   :  { %v934_v32 = vadd.f32 %v933_v23, %v932_v28  ;;  %v943_v47 = vadd.f32 %v942_v8, %v941_v29  ;;  %v969_v39 = vrot.slane %v968_v0, 2  ;;  %v999_v16 = vadd.f32 %v998_v21, %v997_v37 }
 0x28e   :  { %v986_v43 = vadd.f32 %v985_v26, %v984_v55  ;;  %v952_v58 = vadd.f32 %v951_v36, %v950_v9  ;;  %v961_v54 = vadd.f32 %v960_v49, %v959_v25  ;;  %v978_v50 = vrot.slane %v977_v6, 2 }
 0x28f   :  { %v935_v51 = vrot.slane %v934_v32, 1  ;;  %v944_v20 = vrot.slane %v943_v47, 1  ;;  %v970_v4 = vadd.f32 %v969_v39, %v968_v0  ;;  %v2831_v61 = vadd.f32 %v1684_v45, %v999_v16 }
 0x290   :  { %v987_v13 = vrot.slane %v986_v43, 2  ;;  %v953_v41 = vrot.slane %v952_v58, 1  ;;  %v962_v63 = vrot.slane %v961_v54, 1  ;;  %v979_v35 = vadd.f32 %v978_v50, %v977_v6 }
 0x291   :  { %v936_v30 = vadd.f32 %v935_v51, %v934_v32  ;;  %v945_v31 = vadd.f32 %v944_v20, %v943_v47  ;;  %v971_v18 = vrot.slane %v970_v4, 1  ;;  %v1073_v56 = vrot.slane %v2831_v61, 1 }
 0x292   :  { %v988_v15 = vadd.f32 %v987_v13, %v986_v43  ;;  %v954_v12 = vadd.f32 %v953_v41, %v952_v58  ;;  %v963_v42 = vadd.f32 %v962_v63, %v961_v54  ;;  %v980_v11 = vrot.slane %v979_v35, 1 }
 0x293   :  { %v972_v48 = vadd.f32 %v971_v18, %v970_v4  ;;  %v2825_v59 = vadd.f32 %v1684_v45, %v945_v31  ;;  %v2833_v62 = vadd.f32 %v1684_v45, %v936_v30 }
 0x294   :  { %v989_v2 = vrot.slane %v988_v15, 1  ;;  %v981_v46 = vadd.f32 %v980_v11, %v979_v35  ;;  %v2827_v33 = vadd.f32 %v1684_v45, %v954_v12  ;;  %v2829_v17 = vadd.f32 %v1684_v45, %v963_v42 }
 0x295   :  { %v2835_v44 = vadd.f32 %v1684_v45, %v972_v48  ;;  %v1061_v7 = vrot.slane %v2825_v59, 7 }
 0x296   :  { %v990_v24 = vadd.f32 %v989_v2, %v988_v15  ;;  %v2838_v14 = vadd.f32 %v1684_v45, %v981_v46  ;;  %v1063_v27 = vrot.slane %v2827_v33, 6  ;;  %v1065_v22 = vrot.slane %v2829_v17, 5 }
 0x297   :  { %v1062_v57 = vsel %vm3241_vm1, %v1061_v7, %v2833_v62  ;;  %v1067_v28 = vrot.slane %v2835_v44, 4 }
 0x298   :  { %v2841_v1 = vadd.f32 %v1684_v45, %v990_v24  ;;  %v1064_v37 = vsel %vm3240_vm2, %v1063_v27, %v1062_v57  ;;  %v1069_v53 = vrot.slane %v2838_v14, 3 }
 0x299   :  { %v1066_v29 = vsel %vm3239_vm3, %v1065_v22, %v1064_v37 }
 0x29a   :  { %v1068_v55 = vsel %vm3238_vm4, %v1067_v28, %v1066_v29  ;;  %v1071_v9 = vrot.slane %v2841_v1, 2 }
 0x29b   :  { %v1070_v25 = vsel %vm3237_vm5, %v1069_v53, %v1068_v55 }
 0x29c   :  { %v1072_v3 = vsel %vm3236_vm6, %v1071_v9, %v1070_v25 }
 0x29d   :  { %v1074_v23 = vsel %vm3235_vm7, %v1073_v56, %v1072_v3 }
 0x29e   :  { %1079 = vmax.xlane.f32.xlu2 %v1074_v23 }
 0x2f9   :  { %v1078_v8 = vpop.xlane.xlu1 %1077 }
 0x2fa   :  { %v1083_v0 = vrot.slane %v1078_v8, 1  ;;  %v1084_v26 = vrot.slane %v1078_v8, 2  ;;  %v1085_v36 = vrot.slane %v1078_v8, 3  ;;  %v1086_v49 = vrot.slane %v1078_v8, 4 }
 0x2fb   :  { %v1087_v6 = vrot.slane %v1078_v8, 5  ;;  %v1088_v21 = vrot.slane %v1078_v8, 6  ;;  %v1113_v32 = vsub.f32 %v2754_v40, %v1078_v8  ;;  %v1089_v47 = vrot.slane %v1078_v8, 7 }
 0x2fc   :  { %v1114_v39 = vsub.f32 %v2756_v10, %v1083_v0  ;;  %v1115_v43 = vsub.f32 %v2758_v52, %v1084_v26  ;;  %v1116_v58 = vsub.f32 %v2760_v19, %v1085_v36  ;;  %v1117_v54 = vsub.f32 %v2762_v60, %v1086_v49 }
 0x2fd   :  { %v1129_v50 = vmul.f32 1.442695, %v1113_v32  ;;  %v1118_v51 = vsub.f32 %v2764_v5, %v1087_v6  ;;  %v1119_v20 = vsub.f32 %v2766_v38, %v1088_v21  ;;  %v1120_v41 = vsub.f32 %v2790_v34, %v1089_v47 }
 0x2fe   :  { %v1131_v4 = vmul.f32 1.442695, %v1114_v39  ;;  %v1133_v13 = vmul.f32 1.442695, %v1115_v43  ;;  %v1135_v45 = vmul.f32 1.442695, %v1116_v58 }
 0x2ff   :  { %1813 = vpow2.f32 %v1129_v50  ;;  %v1137_v40 = vmul.f32 1.442695, %v1117_v54  ;;  %v1139_v10 = vmul.f32 1.442695, %v1118_v51  ;;  %v1141_v52 = vmul.f32 1.442695, %v1119_v20 }
 0x300   :  { %1815 = vpow2.f32 %v1131_v4  ;;  %v1143_v19 = vmul.f32 1.442695, %v1120_v41 }
 0x301   :  { %1817 = vpow2.f32 %v1133_v13 }
 0x302   :  { %1819 = vpow2.f32 %v1135_v45 }
 0x303   :  { %1821 = vpow2.f32 %v1137_v40 }
 0x304   :  { %1823 = vpow2.f32 %v1139_v10 }
 0x305   :  { %v2864_v60 = vpop.eup %1813  ;;  %1825 = vpow2.f32 %v1141_v52 }
 0x306   :  { %v2866_v5 = vpop.eup %1815  ;;  %1827 = vpow2.f32 %v1143_v19 }
 0x307   :  { %v2868_v38 = vpop.eup %1817  ;;  %v1177_v34 = vrot.slane %v2866_v5, 7 }
 0x308   :  { %v2871_v63 = vpop.eup %1819  ;;  %v1179_v35 = vrot.slane %v2868_v38, 6 }
 0x309   :  { %v2874_v16 = vpop.eup %1821  ;;  %v1178_v30 = vsel %vm3241_vm1, %v1177_v34, %v2864_v60  ;;  %v1181_v31 = vrot.slane %v2871_v63, 5 }
 0x30a   :  { %v2879_v18 = vpop.eup %1823  ;;  %v1180_v15 = vsel %vm3240_vm2, %v1179_v35, %v1178_v30  ;;  %v1183_v12 = vrot.slane %v2874_v16, 4 }
 0x30b   :  { %v2883_v42 = vpop.eup %1825  ;;  %v1182_v11 = vsel %vm3239_vm3, %v1181_v31, %v1180_v15  ;;  %v1185_v48 = vrot.slane %v2879_v18, 3 }
 0x30c   :  { %v2887_v2 = vpop.eup %1827  ;;  %v1184_v46 = vsel %vm3238_vm4, %v1183_v12, %v1182_v11  ;;  %v1187_v24 = vrot.slane %v2883_v42, 2 }
 0x30d   :  { %v1186_v7 = vsel %vm3237_vm5, %v1185_v48, %v1184_v46  ;;  %v1189_v27 = vrot.slane %v2887_v2, 1 }
 0x30e   :  { %v1188_v57 = vsel %vm3236_vm6, %v1187_v24, %v1186_v7 }
 0x30f   :  { %v1190_v22 = vsel %vm3235_vm7, %v1189_v27, %v1188_v57 }
 0x310   :  { %1207 = vadd.xlane.f32.xlu0 %v1190_v22 }
 0x311   :  { %v1080_v37 = vpop.xlane.xlu2 %1079 }
 0x312   :  { %v1090_v28 = vrot.slane %v1080_v37, 1  ;;  %v1091_v29 = vrot.slane %v1080_v37, 2  ;;  %v1092_v53 = vrot.slane %v1080_v37, 3  ;;  %v1093_v56 = vrot.slane %v1080_v37, 4 }
 0x313   :  { %v1121_v55 = vsub.f32 %v2833_v62, %v1080_v37  ;;  %v1094_v9 = vrot.slane %v1080_v37, 5  ;;  %v1095_v25 = vrot.slane %v1080_v37, 6  ;;  %v1096_v3 = vrot.slane %v1080_v37, 7 }
 0x314   :  { %v1122_v23 = vsub.f32 %v2825_v59, %v1090_v28  ;;  %v1123_v8 = vsub.f32 %v2827_v33, %v1091_v29  ;;  %v1124_v0 = vsub.f32 %v2829_v17, %v1092_v53  ;;  %v1125_v26 = vsub.f32 %v2835_v44, %v1093_v56 }
 0x315   :  { %v1145_v36 = vmul.f32 1.442695, %v1121_v55  ;;  %v1126_v49 = vsub.f32 %v2838_v14, %v1094_v9  ;;  %v1127_v6 = vsub.f32 %v2841_v1, %v1095_v25  ;;  %v1128_v62 = vsub.f32 %v2831_v61, %v1096_v3 }
 0x316   :  { %v1147_v21 = vmul.f32 1.442695, %v1122_v23  ;;  %v1149_v32 = vmul.f32 1.442695, %v1123_v8  ;;  %v1151_v47 = vmul.f32 1.442695, %v1124_v0 }
 0x317   :  { %1829 = vpow2.f32 %v1145_v36  ;;  %v1153_v39 = vmul.f32 1.442695, %v1125_v26  ;;  %v1155_v59 = vmul.f32 1.442695, %v1126_v49  ;;  %v1157_v33 = vmul.f32 1.442695, %v1127_v6 }
 0x318   :  { %1831 = vpow2.f32 %v1147_v21  ;;  %v1159_v17 = vmul.f32 1.442695, %v1128_v62 }
 0x319   :  { %1833 = vpow2.f32 %v1149_v32 }
 0x31a   :  { %1835 = vpow2.f32 %v1151_v47 }
 0x31b   :  { %1837 = vpow2.f32 %v1153_v39 }
 0x31c   :  { %1839 = vpow2.f32 %v1155_v59 }
 0x31d   :  { %v2903_v44 = vpop.eup %1829  ;;  %1841 = vpow2.f32 %v1157_v33 }
 0x31e   :  { %v2905_v14 = vpop.eup %1831  ;;  %1843 = vpow2.f32 %v1159_v17 }
 0x31f   :  { %v2907_v1 = vpop.eup %1833  ;;  %v1191_v61 = vrot.slane %v2905_v14, 7 }
 0x320   :  { %v2910_v43 = vpop.eup %1835  ;;  %v1193_v58 = vrot.slane %v2907_v1, 6 }
 0x321   :  { %v2913_v54 = vpop.eup %1837  ;;  %v1192_v50 = vsel %vm3241_vm1, %v1191_v61, %v2903_v44  ;;  %v1195_v51 = vrot.slane %v2910_v43, 5 }
 0x322   :  { %v2918_v20 = vpop.eup %1839  ;;  %v1194_v4 = vsel %vm3240_vm2, %v1193_v58, %v1192_v50  ;;  %v1197_v13 = vrot.slane %v2913_v54, 4 }
 0x323   :  { %v2922_v45 = vpop.eup %1841  ;;  %v1196_v41 = vsel %vm3239_vm3, %v1195_v51, %v1194_v4  ;;  %v1199_v40 = vrot.slane %v2918_v20, 3 }
 0x324   :  { %v2926_v10 = vpop.eup %1843  ;;  %v1198_v52 = vsel %vm3238_vm4, %v1197_v13, %v1196_v41  ;;  %v1201_v19 = vrot.slane %v2922_v45, 2 }
 0x325   :  { %v1200_v34 = vsel %vm3237_vm5, %v1199_v40, %v1198_v52  ;;  %v1203_v35 = vrot.slane %v2926_v10, 1 }
 0x326   :  { %v1202_v30 = vsel %vm3236_vm6, %v1201_v19, %v1200_v34 }
 0x327   :  { %v1204_v31 = vsel %vm3235_vm7, %v1203_v35, %v1202_v30 }
 0x328   :  { %1209 = vadd.xlane.f32.xlu2 %v1204_v31 }
 0x383   :  { %v1208_v15 = vpop.xlane.xlu0 %1207 }
 0x384   :  { %v2934_v12 = vrot.slane %v1208_v15, 1  ;;  %1845 = vrcp.f32 %v1208_v15  ;;  %v2936_v11 = vrot.slane %v1208_v15, 2  ;;  %v2938_v48 = vrot.slane %v1208_v15, 3 }
 0x385   :  { %v2941_v46 = vrot.slane %v1208_v15, 4  ;;  %v2944_v24 = vrot.slane %v1208_v15, 5  ;;  %v1254_v7 = vand.u32 2147483648, %v1208_v15  ;;  %v2946_v27 = vrot.slane %v1208_v15, 6 }
 0x386   :  { %1847 = vrcp.f32 %v2934_v12  ;;  %v1267_v57 = vand.u32 2147483647, %v2934_v12  ;;  %v1269_v22 = vand.u32 2147483648, %v2934_v12  ;;  %v2953_v28 = vrot.slane %v1208_v15, 7 }
 0x387   :  { %1849 = vrcp.f32 %v2936_v11  ;;  %vm1248_vm8 = vweird.f32 %v1208_v15  ;;  %v1252_v29 = vand.u32 2147483647, %v1208_v15  ;;  %v1282_v53 = vand.u32 2147483647, %v2936_v11 }
 0x388   :  { %1851 = vrcp.f32 %v2938_v48  ;;  %v1284_v55 = vand.u32 2147483648, %v2936_v11  ;;  %v1299_v9 = vand.u32 2147483648, %v2938_v48  ;;  %v2960_v3 = vor.u32 1.1754944e-38, %v1254_v7 }
 0x389   :  { %1853 = vrcp.f32 %v2941_v46  ;;  %vm1263_vm9 = vweird.f32 %v2934_v12  ;;  %vm1278_vm10 = vweird.f32 %v2936_v11  ;;  %v1297_v23 = vand.u32 2147483647, %v2938_v48 }
 0x38a   :  { %v2951_v37 = vpop.eup %1845  ;;  %vm2967_vm12 = vcmp.eq.f32.partialorder %v1267_v57, 8.507059e+37  ;;  %v1270_v49 = vor.u32 1.1754944e-38, %v1269_v22  ;;  %vm2972_vm13 = vcmp.eq.f32.partialorder %v1282_v53, 8.507059e+37  ;;  %vm1293_vm14 = vweird.f32 %v2938_v48 }
 0x38b   :  { %v1244_v56 = vmul.f32 %v2951_v37, %v1208_v15  ;;  %vm1249_vm11 = vweird.f32 %v2951_v37  ;;  %v1312_v32 = vand.u32 2147483647, %v2941_v46  ;;  %v1314_v62 = vand.u32 2147483648, %v2941_v46 }
 0x38c   :  { %v1848_v25 = vpop.eup %1847  ;;  %1855 = vrcp.f32 %v2944_v24  ;;  %vm2981_vm15 = vcmp.eq.f32.partialorder %v1252_v29, 8.507059e+37  ;;  %v1285_v17 = vor.u32 1.1754944e-38, %v1284_v55  ;;  %v1300_v61 = vor.u32 1.1754944e-38, %v1299_v9  ;;  %vm3001_vm3 = vmor %vm1248_vm8, %vm1249_vm11 }
 0x38d   :  { %v1850_v8 = vpop.eup %1849  ;;  %v1245_v0 = vsub.f32 1.0, %v1244_v56  ;;  %v1259_v26 = vmul.f32 %v1848_v25, %v2934_v12  ;;  %vm1264_vm0 = vweird.f32 %v1848_v25  ;;  %vm2986_vm7 = vcmp.eq.f32.partialorder %v1297_v23, 8.507059e+37 }
 0x38e   :  { %v1274_v6 = vmul.f32 %v1850_v8, %v2936_v11  ;;  %v1852_v47 = vpop.eup %1851  ;;  %vm1279_vm5 = vweird.f32 %v1850_v8  ;;  %1857 = vrcp.f32 %v2946_v27  ;;  %vm2994_vm4 = vcmp.eq.f32.partialorder %v1312_v32, 8.507059e+37  ;;  %vm1265_vm1 = vmor %vm1263_vm9, %vm1264_vm0 }
 0x38f   :  { %v1246_v39 = vmul.f32 %v2951_v37, %v1245_v0  ;;  %v1260_v33 = vsub.f32 1.0, %v1259_v26  ;;  %v1289_v50 = vmul.f32 %v1852_v47, %v2938_v48  ;;  %v1854_v4 = vpop.eup %1853  ;;  %v1315_v35 = vor.u32 1.1754944e-38, %v1314_v62  ;;  %vm1280_vm8 = vmor %vm1278_vm10, %vm1279_vm5 }
 0x390   :  { %v1275_v58 = vsub.f32 1.0, %v1274_v6  ;;  %v1304_v19 = vmul.f32 %v1854_v4, %v2941_v46  ;;  %vm1323_vm2 = vweird.f32 %v2944_v24  ;;  %v1327_v7 = vand.u32 2147483647, %v2944_v24 }
 0x391   :  { %v1247_v13 = vadd.f32 %v2951_v37, %v1246_v39  ;;  %v1261_v41 = vmul.f32 %v1848_v25, %v1260_v33  ;;  %v1290_v52 = vsub.f32 1.0, %v1289_v50  ;;  %v1329_v57 = vand.u32 2147483648, %v2944_v24 }
 0x392   :  { %v1276_v40 = vmul.f32 %v1850_v8, %v1275_v58  ;;  %v1856_v22 = vpop.eup %1855  ;;  %vm1294_vm6 = vweird.f32 %v1852_v47  ;;  %v1305_v15 = vsub.f32 1.0, %v1304_v19  ;;  %vm1309_vm11 = vweird.f32 %v1854_v4 }
 0x393   :  { %v1262_v31 = vadd.f32 %v1848_v25, %v1261_v41  ;;  %v1291_v53 = vmul.f32 %v1852_v47, %v1290_v52  ;;  %v1251_v56 = vsel %vm3001_vm3, %v2951_v37, %v1247_v13  ;;  %v1319_v9 = vmul.f32 %v1856_v22, %v2944_v24 }
 0x394   :  { %v1277_v29 = vadd.f32 %v1850_v8, %v1276_v40  ;;  %v1306_v26 = vmul.f32 %v1854_v4, %v1305_v15  ;;  %v1858_v6 = vpop.eup %1857  ;;  %vm3024_vm3 = vcmp.eq.f32.partialorder %v1327_v7, 8.507059e+37  ;;  %v1256_v36 = vsel %vm2981_vm15, %v2960_v3, %v1251_v56 }
 0x395   :  { %v1266_v55 = vsel %vm1265_vm1, %v1848_v25, %v1262_v31  ;;  %v1292_v0 = vadd.f32 %v1852_v47, %v1291_v53  ;;  %vm1295_vm1 = vmor %vm1293_vm14, %vm1294_vm6  ;;  %v1320_v37 = vsub.f32 1.0, %v1319_v9  ;;  %v1330_v25 = vor.u32 1.1754944e-38, %v1329_v57 }
 0x396   :  { %v1271_v12 = vsel %vm2967_vm12, %v1270_v49, %v1266_v55  ;;  %v1281_v23 = vsel %vm1280_vm8, %v1850_v8, %v1277_v29  ;;  %v1307_v49 = vadd.f32 %v1854_v4, %v1306_v26  ;;  %v1334_v62 = vmul.f32 %v1858_v6, %v2946_v27 }
 0x397   :  { %v1286_v32 = vsel %vm2972_vm13, %v1285_v17, %v1281_v23  ;;  %v1296_v8 = vsel %vm1295_vm1, %v1852_v47, %v1292_v0  ;;  %v1272_v21 = vmul.f32 %v2866_v5, %v1271_v12  ;;  %vm3288_vm5 = vweird.f32 %v2941_v46 }
 0x398   :  { %v1301_v48 = vsel %vm2986_vm7, %v1300_v61, %v1296_v8  ;;  %vm1310_vm6 = vmor %vm3288_vm5, %vm1309_vm11  ;;  %v1321_v39 = vmul.f32 %v1856_v22, %v1320_v37  ;;  %vm1324_vm9 = vweird.f32 %v1856_v22  ;;  %v1287_v33 = vmul.f32 %v2868_v38, %v1286_v32 }
 0x399   :  { %v1311_v17 = vsel %vm1310_vm6, %v1854_v4, %v1307_v49  ;;  %v1335_v59 = vsub.f32 1.0, %v1334_v62  ;;  %v1342_v3 = vand.u32 2147483647, %v2946_v27  ;;  %v1344_v5 = vand.u32 2147483648, %v2946_v27  ;;  %vm1325_vm7 = vmor %vm1323_vm2, %vm1324_vm9 }
 0x39a   :  { %v1316_v47 = vsel %vm2994_vm4, %v1315_v35, %v1311_v17  ;;  %v1322_v58 = vadd.f32 %v1856_v22, %v1321_v39  ;;  %1859 = vrcp.f32 %v2953_v28  ;;  %v1257_v46 = vmul.f32 %v2864_v60, %v1256_v36 }
 0x39b   :  { %v3044_v61 = vpop.xlane.xlu2 %1209  ;;  %v1302_v50 = vmul.f32 %v2871_v63, %v1301_v48  ;;  %v1336_v38 = vmul.f32 %v1858_v6, %v1335_v59  ;;  %vm1339_vm10 = vweird.f32 %v1858_v6  ;;  %vm1338_vm4 = vweird.f32 %v2946_v27 }
 0x39c   :  { %v3051_v51 = vrot.slane %v3044_v61, 1  ;;  %1861 = vrcp.f32 %v3044_v61  ;;  %v1326_v4 = vsel %vm1325_vm7, %v1856_v22, %v1322_v58  ;;  %v1317_v13 = vmul.f32 %v2874_v16, %v1316_v47  ;;  %vm1340_vm2 = vmor %vm1338_vm4, %vm1339_vm10 }
 0x39d   :  { %v1331_v60 = vsel %vm3024_vm3, %v1330_v25, %v1326_v4  ;;  %v1337_v41 = vadd.f32 %v1858_v6, %v1336_v38  ;;  %v1499_v63 = vrot.slane %v1272_v21, 7  ;;  %vm1343_vm12 = vcmp.eq.f32.partialorder %v1342_v3, 8.507059e+37 }
 0x39e   :  { %1863 = vrcp.f32 %v3051_v51  ;;  %v1345_v24 = vor.u32 1.1754944e-38, %v1344_v5  ;;  %v1501_v40 = vrot.slane %v1287_v33, 6  ;;  %v1357_v19 = vand.u32 2147483647, %v2953_v28 }
 0x39f   :  { %v1341_v52 = vsel %vm1340_vm2, %v1858_v6, %v1337_v41  ;;  %vm3289_vm13 = vcmask 1041409   ;;  %v1503_v35 = vrot.slane %v1302_v50, 5  ;;  %v1332_v16 = vmul.f32 %v2879_v18, %v1331_v60 }
 0x3a0   :  { %v1500_v34 = vsel %vm3289_vm13, %v1499_v63, %v1257_v46  ;;  %v1860_v27 = vpop.eup %1859  ;;  %v1346_v30 = vsel %vm1343_vm12, %v1345_v24, %v1341_v52  ;;  %v1359_v31 = vand.u32 2147483648, %v2953_v28  ;;  %vm3290_vm14 = vcmask 1042434  }
 0x3a1   :  { %v1502_v7 = vsel %vm3290_vm14, %v1501_v40, %v1500_v34  ;;  %v1349_v57 = vmul.f32 %v1860_v27, %v2953_v28  ;;  %vm3291_vm15 = vcmask 1043459   ;;  %v1505_v29 = vrot.slane %v1317_v13, 4 }
 0x3a2   :  { %v1504_v22 = vsel %vm3291_vm15, %v1503_v35, %v1502_v7  ;;  %v1862_v53 = vpop.eup %1861  ;;  %v1347_v15 = vmul.f32 %v2883_v42, %v1346_v30  ;;  %vm1353_vm0 = vweird.f32 %v2953_v28  ;;  %vm3068_vm8 = vcmp.eq.f32.partialorder %v1357_v19, 8.507059e+37 }
 0x3a3   :  { %v1350_v56 = vsub.f32 1.0, %v1349_v57  ;;  %vm3294_vm11 = vcmask 1044484   ;;  %vm1354_vm1 = vweird.f32 %v1860_v27  ;;  %v1360_v12 = vor.u32 1.1754944e-38, %v1359_v31 }
 0x3a4   :  { %v1506_v18 = vsel %vm3294_vm11, %v1505_v29, %v1504_v22  ;;  %v3073_v9 = vpop.eup %1863  ;;  %v1507_v23 = vrot.slane %v1332_v16, 3  ;;  %v1364_v0 = vmul.f32 %v1862_v53, %v3044_v61  ;;  %v3077_v6 = vrot.slane %v3044_v61, 2  ;;  %vm1355_vm5 = vmor %vm1353_vm0, %vm1354_vm1 }
 0x3a5   :  { %v1351_v26 = vmul.f32 %v1860_v27, %v1350_v56  ;;  %v3080_v42 = vrot.slane %v3044_v61, 3  ;;  %v3083_v32 = vrot.slane %v3044_v61, 4  ;;  %vm3295_vm3 = vcmask 1045509  }
 0x3a6   :  { %v1508_v37 = vsel %vm3295_vm3, %v1507_v23, %v1506_v18  ;;  %v1509_v11 = vrot.slane %v1347_v15, 2  ;;  %v1365_v25 = vsub.f32 1.0, %v1364_v0  ;;  %v1379_v36 = vmul.f32 %v3073_v9, %v3051_v51 }
 0x3a7   :  { %v1352_v8 = vadd.f32 %v1860_v27, %v1351_v26  ;;  %v3089_v49 = vrot.slane %v3044_v61, 5  ;;  %v3092_v62 = vrot.slane %v3044_v61, 6  ;;  %v1374_v21 = vand.u32 2147483648, %v3044_v61 }
 0x3a8   :  { %v1366_v48 = vmul.f32 %v1862_v53, %v1365_v25  ;;  %vm1368_vm6 = vweird.f32 %v3044_v61  ;;  %vm1369_vm9 = vweird.f32 %v1862_v53  ;;  %v1380_v39 = vsub.f32 1.0, %v1379_v36 }
 0x3a9   :  { %v1356_v33 = vsel %vm1355_vm5, %v1860_v27, %v1352_v8  ;;  %vm3296_vm7 = vcmask 1046534   ;;  %v1372_v59 = vand.u32 2147483647, %v3044_v61  ;;  %1865 = vrcp.f32 %v3077_v6  ;;  %vm1370_vm10 = vmor %vm1368_vm6, %vm1369_vm9 }
 0x3aa   :  { %v1510_v17 = vsel %vm3296_vm7, %v1509_v11, %v1508_v37  ;;  %v1361_v3 = vsel %vm3068_vm8, %v1360_v12, %v1356_v33  ;;  %v1367_v47 = vadd.f32 %v1862_v53, %v1366_v48  ;;  %v1381_v58 = vmul.f32 %v3073_v9, %v1380_v39 }
 0x3ab   :  { %v1387_v28 = vand.u32 2147483647, %v3051_v51  ;;  %v1362_v5 = vmul.f32 %v2887_v2, %v1361_v3  ;;  %v1375_v46 = vor.u32 1.1754944e-38, %v1374_v21  ;;  %vm1384_vm4 = vweird.f32 %v3073_v9 }
 0x3ac   :  { %1867 = vrcp.f32 %v3080_v42  ;;  %v1371_v50 = vsel %vm1370_vm10, %v1862_v53, %v1367_v47  ;;  %v1382_v38 = vadd.f32 %v3073_v9, %v1381_v58  ;;  %v1389_v4 = vand.u32 2147483648, %v3051_v51 }
 0x3ad   :  { %v1402_v13 = vand.u32 2147483647, %v3077_v6  ;;  %v1511_v60 = vrot.slane %v1362_v5, 1  ;;  %vm1373_vm2 = vcmp.eq.f32.partialorder %v1372_v59, 8.507059e+37  ;;  %vm1383_vm12 = vweird.f32 %v3051_v51 }
 0x3ae   :  { %v1404_v41 = vand.u32 2147483648, %v3077_v6  ;;  %v3115_v2 = vrot.slane %v3044_v61, 7  ;;  %v1376_v63 = vsel %vm1373_vm2, %v1375_v46, %v1371_v50  ;;  %vm3117_vm13 = vmor %vm1383_vm12, %vm1384_vm4  ;;  %vm3121_vm14 = vcmp.eq.f32.partialorder %v1387_v28, 8.507059e+37 }
 0x3af   :  { %v1417_v52 = vand.u32 2147483647, %v3080_v42  ;;  %v1866_v19 = vpop.eup %1865  ;;  %vm3301_vm15 = vcmask 1047559   ;;  %v1386_v51 = vsel %vm3117_vm13, %v3073_v9, %v1382_v38  ;;  %vm1398_vm0 = vweird.f32 %v3077_v6 }
 0x3b0   :  { %v1512_v34 = vsel %vm3301_vm15, %v1511_v60, %v1510_v17  ;;  %1869 = vrcp.f32 %v3083_v32  ;;  %v1390_v61 = vor.u32 1.1754944e-38, %v1389_v4  ;;  %v1394_v35 = vmul.f32 %v1866_v19, %v3077_v6 }
 0x3b1   :  { %1529 = vst [vmem:[#allocation9] sm:$0xff] %v1512_v34  ;;  %1547 = vmatmul.f32.vlgmr.msrb.gmra.mxu0 %v1512_v34  ;;  %vm3133_vm8 = vcmp.eq.f32.partialorder %v1402_v13, 8.507059e+37  ;;  %vm1413_vm11 = vweird.f32 %v3080_v42  ;;  %v3139_v30 = vmul.f32 %v2903_v44, %v1376_v63  ;;  %v1405_v31 = vor.u32 1.1754944e-38, %v1404_v41 }
 0x3b2   :  { %v1868_v16 = vpop.eup %1867  ;;  %v1419_v7 = vand.u32 2147483648, %v3080_v42  ;;  %1871 = vrcp.f32 %v3089_v49  ;;  %v1391_v57 = vsel %vm3121_vm14, %v1390_v61, %v1386_v51  ;;  %v1395_v22 = vsub.f32 1.0, %v1394_v35 }
 0x3b3   :  { %v1409_v29 = vmul.f32 %v1868_v16, %v3080_v42  ;;  %vm3146_vm1 = vcmp.eq.f32.partialorder %v1417_v52, 8.507059e+37  ;;  %v1432_v15 = vand.u32 2147483647, %v3083_v32  ;;  %v1434_v44 = vand.u32 2147483648, %v3083_v32 }
 0x3b4   :  { %v1449_v56 = vand.u32 2147483648, %v3089_v49  ;;  %1873 = vrcp.f32 %v3092_v62  ;;  %v1396_v55 = vmul.f32 %v1866_v19, %v1395_v22  ;;  %vm1399_vm3 = vweird.f32 %v1866_v19 }
 0x3b5   :  { %v1410_v18 = vsub.f32 1.0, %v1409_v29  ;;  %v1447_v9 = vand.u32 2147483647, %v3089_v49  ;;  %v1392_v23 = vmul.f32 %v2905_v14, %v1391_v57  ;;  %v1420_v0 = vor.u32 1.1754944e-38, %v1419_v7  ;;  %vm1400_vm7 = vmor %vm1398_vm0, %vm1399_vm3 }
 0x3b6   :  { %v1870_v12 = vpop.eup %1869  ;;  %vm1428_vm5 = vweird.f32 %v3083_v32  ;;  %1875 = vrcp.f32 %v3115_v2  ;;  %v1397_v26 = vadd.f32 %v1866_v19, %v1396_v55  ;;  %vm1414_vm6 = vweird.f32 %v1868_v16 }
 0x3b7   :  { %v1411_v37 = vmul.f32 %v1868_v16, %v1410_v18  ;;  %v1424_v11 = vmul.f32 %v1870_v12, %v3083_v32  ;;  %vm1443_vm9 = vweird.f32 %v3089_v49  ;;  %vm3162_vm10 = vcmp.eq.f32.partialorder %v1432_v15, 8.507059e+37  ;;  %vm1415_vm2 = vmor %vm1413_vm11, %vm1414_vm6 }
 0x3b8   :  { %v1872_v25 = vpop.eup %1871  ;;  %v1435_v14 = vor.u32 1.1754944e-38, %v1434_v44  ;;  %v1450_v8 = vor.u32 1.1754944e-38, %v1449_v56  ;;  %v1462_v21 = vand.u32 2147483647, %v3092_v62  ;;  %v1401_v48 = vsel %vm1400_vm7, %v1866_v19, %v1397_v26 }
 0x3b9   :  { %v1412_v39 = vadd.f32 %v1868_v16, %v1411_v37  ;;  %v1425_v33 = vsub.f32 1.0, %v1424_v11  ;;  %v1439_v17 = vmul.f32 %v1872_v25, %v3089_v49  ;;  %vm3168_vm4 = vcmp.eq.f32.partialorder %v1447_v9, 8.507059e+37 }
 0x3ba   :  { %v1874_v3 = vpop.eup %1873  ;;  %v1406_v6 = vsel %vm3133_vm8, %v1405_v31, %v1401_v48  ;;  %vm1429_vm12 = vweird.f32 %v1870_v12  ;;  %vm1458_vm13 = vweird.f32 %v3092_v62  ;;  %v1464_v47 = vand.u32 2147483648, %v3092_v62 }
 0x3bb   :  { %v1477_v58 = vand.u32 2147483647, %v3115_v2  ;;  %v1407_v28 = vmul.f32 %v2907_v1, %v1406_v6  ;;  %v1416_v5 = vsel %vm1415_vm2, %v1868_v16, %v1412_v39  ;;  %v1426_v46 = vmul.f32 %v1870_v12, %v1425_v33  ;;  %vm1430_vm15 = vmor %vm1428_vm5, %vm1429_vm12 }
 0x3bc   :  { %v1440_v50 = vsub.f32 1.0, %v1439_v17  ;;  %v1876_v38 = vpop.eup %1875  ;;  %v1421_v4 = vsel %vm3146_vm1, %v1420_v0, %v1416_v5  ;;  %vm1444_vm14 = vweird.f32 %v1872_v25  ;;  %v1454_v42 = vmul.f32 %v1874_v3, %v3092_v62 }
 0x3bd   :  { %v1479_v13 = vand.u32 2147483648, %v3115_v2  ;;  %v1422_v60 = vmul.f32 %v2910_v43, %v1421_v4  ;;  %v1427_v41 = vadd.f32 %v1870_v12, %v1426_v46  ;;  %v1469_v24 = vmul.f32 %v1876_v38, %v3115_v2  ;;  %vm1445_vm11 = vmor %vm1443_vm9, %vm1444_vm14 }
 0x3be   :  { %v1441_v63 = vmul.f32 %v1872_v25, %v1440_v50  ;;  %v1455_v1 = vsub.f32 1.0, %v1454_v42  ;;  %vm1459_vm0 = vweird.f32 %v1874_v3  ;;  %v1513_v40 = vrot.slane %v1392_v23, 7 }
 0x3bf   :  { %v1515_v52 = vrot.slane %v1407_v28, 6  ;;  %v1431_v19 = vsel %vm1430_vm15, %v1870_v12, %v1427_v41  ;;  %v1470_v51 = vsub.f32 1.0, %v1469_v24  ;;  %vm1474_vm8 = vweird.f32 %v1876_v38  ;;  %vm1460_vm6 = vmor %vm1458_vm13, %vm1459_vm0 }
 0x3c0   :  { %v1442_v34 = vadd.f32 %v1872_v25, %v1441_v63  ;;  %v1436_v61 = vsel %vm3162_vm10, %v1435_v14, %v1431_v19  ;;  %v1456_v43 = vmul.f32 %v1874_v3, %v1455_v1  ;;  %vm3310_vm1 = vcmask 1041409  }
 0x3c1   :  { %v1514_v32 = vsel %vm3310_vm1, %v1513_v40, %v3139_v30  ;;  %v1517_v35 = vrot.slane %v1422_v60, 5  ;;  %v1437_v27 = vmul.f32 %v2913_v54, %v1436_v61  ;;  %v1471_v31 = vmul.f32 %v1876_v38, %v1470_v51 }
 0x3c2   :  { %v1446_v16 = vsel %vm1445_vm11, %v1872_v25, %v1442_v34  ;;  %vm3311_vm3 = vcmask 1042434   ;;  %v1457_v22 = vadd.f32 %v1874_v3, %v1456_v43  ;;  %v1465_v29 = vor.u32 1.1754944e-38, %v1464_v47 }
 0x3c3   :  { %v1516_v7 = vsel %vm3311_vm3, %v1515_v52, %v1514_v32  ;;  %v1451_v57 = vsel %vm3168_vm4, %v1450_v8, %v1446_v16  ;;  %vm3312_vm5 = vcmask 1043459   ;;  %v1472_v30 = vadd.f32 %v1876_v38, %v1471_v31 }
 0x3c4   :  { %v1518_v53 = vsel %vm3312_vm5, %v1517_v35, %v1516_v7  ;;  %v1452_v49 = vmul.f32 %v2918_v20, %v1451_v57  ;;  %vm1473_vm9 = vweird.f32 %v3115_v2  ;;  %v1519_v54 = vrot.slane %v1437_v27, 4 }
 0x3c5   :  { %v1461_v15 = vsel %vm1460_vm6, %v1874_v3, %v1457_v22  ;;  %vm1463_vm7 = vcmp.eq.f32.partialorder %v1462_v21, 8.507059e+37  ;;  %vm1475_vm10 = vmor %vm1473_vm9, %vm1474_vm8  ;;  %vm1478_vm2 = vcmp.eq.f32.partialorder %v1477_v58, 8.507059e+37  ;;  %v1480_v44 = vor.u32 1.1754944e-38, %v1479_v13 }
 0x3c6   :  { %v1466_v56 = vsel %vm1463_vm7, %v1465_v29, %v1461_v15  ;;  %v1476_v55 = vsel %vm1475_vm10, %v1876_v38, %v1472_v30  ;;  %vm3313_vm4 = vcmask 1044484   ;;  %v1521_v9 = vrot.slane %v1452_v49, 3 }
 0x3c7   :  { %v1520_v18 = vsel %vm3313_vm4, %v1519_v54, %v1518_v53  ;;  %v1467_v20 = vmul.f32 %v2922_v45, %v1466_v56  ;;  %v1481_v12 = vsel %vm1478_vm2, %v1480_v44, %v1476_v55  ;;  %vm3314_vm12 = vcmask 1045509  }
 0x3c8   :  { %v1482_v62 = vmul.f32 %v2926_v10, %v1481_v12  ;;  %v1522_v23 = vsel %vm3314_vm12, %v1521_v9, %v1520_v18  ;;  %vm3315_vm13 = vcmask 1046534   ;;  %vm3316_vm14 = vcmask 1047559  }
 0x3c9   :  { %v1523_v2 = vrot.slane %v1467_v20, 2 }
 0x3ca   :  { %v1525_v0 = vrot.slane %v1482_v62, 1 }
 0x3cb   :  { %v1524_v26 = vsel %vm3315_vm13, %v1523_v2, %v1522_v23 }
 0x3cc   :  { %v1526_v37 = vsel %vm3316_vm14, %v1525_v0, %v1524_v26 }
 0x3cd   :  { %1530 = vst [vmem:[#allocation9 + $0x8] sm:$0xff] %v1526_v37  ;;  %1567 = vmatmul.f32.vlgmr.msrb.gmra.mxu1 %v1526_v37 }
 0x3ce   :  { %1598 = dma.vmem_to_hbm [thread:$0]  %s1591_s18, 256, %s1593_s19, [#allocation10], %s2006_s13, %s2006_s13, %s2007_s14  }
 0x42e   :  { %v1548_v45 = vpop.f32.mrf.mxu0 }
 0x42f   :  { %1571 = vst [vmem:[#allocation8] sm:$0xff] %v1548_v45 }
 0x44a   :  { %v1568_v10 = vpop.f32.mrf.mxu1 }
 0x44b   :  { %1572 = vst [vmem:[#allocation8 + $0x8] sm:$0xff] %v1568_v10 }
 0x44c   :  { %1585 = dma.vmem_to_hbm [thread:$0]  %s1578_s5, 256, %s1580_s23, [#allocation4], %s2006_s13, %s2006_s13, %s2007_s14  }
 0x44d   :  { %2001 = dma.done.wait [#allocation4], 256  }
 0x44e   :  { %2002 = vsyncadd [#allocation4], 4294967040 }
 0x44f   :  { %2003 = dma.done.wait [#allocation10], 256  }
 0x450   :  { %2004 = vsyncadd [#allocation10], 4294967040 }
 0x451   :  { %1607 = vsyncpa [#allocation3], 1 }
 0x452   :  { %1608 = vsyncpa [#allocation6], 1 }
 0x453   :  { %1609 = vsyncpa [#allocation4], 1 }
 0x454   :  { %1610 = vsyncpa [#allocation10], 1 }

</bundles_post_ra>
